<compile_context>
chip_gen: v6e
topology: v6e:2x2x1
jax: 0.10.0
libtpu: 0.0.40
codegen_flags: <defaults>
</compile_context>

<pallas_src>
import jax
import jax.numpy as jnp
from jax import lax
from jax.experimental import pallas as pl
from jax.experimental.pallas import tpu as pltpu

LATENT_DIM = 256
ACTION_DIM = 2
HIDDEN = 512
LN_EPS = 1e-5            # torch.nn.LayerNorm default
INV_HIDDEN = 1.0 / HIDDEN


def _round_up(x, m):
    return ((x + m - 1) // m) * m


def _layernorm(h, gamma, beta):
    # Two-pass (subtract-mean) biased variance, matching torch.nn.LayerNorm.
    mu = jnp.sum(h, axis=-1, keepdims=True) * INV_HIDDEN
    d = h - mu
    var = jnp.sum(d * d, axis=-1, keepdims=True) * INV_HIDDEN
    return d * lax.rsqrt(var + LN_EPS) * gamma + beta


def predictor_kernel(
    s_ref,                 # (tb, 256)  f32/bf16  state rows
    a_ref,                 # (tb, 2)    f32       action rows
    w1s_ref,               # (256, 512) bf16      first 256 rows of W1
    w1a_ref,               # (2, 512)   f32       last 2 rows of W1 (action part)
    b1_ref,                # (1, 512)   f32
    g1_ref, be1_ref,       # (1, 512)   f32       LayerNorm 1
    w2_ref,                # (512, 512) bf16
    b2_ref,                # (1, 512)   f32
    g2_ref, be2_ref,       # (1, 512)   f32       LayerNorm 2
    w3_ref,                # (512, 256) bf16
    b3_ref,                # (1, 256)   f32
    o_ref,                 # (tb, 256)
):
    s = s_ref[...]
    a = a_ref[...].astype(jnp.float32)
    w1a = w1a_ref[...]

    # ---- Linear 1: clean 256-wide contraction on the MXU; the 2-wide action
    # contribution is two broadcasted FMAs on the VPU (avoids a K=258 concat).
    h = jnp.dot(s.astype(jnp.bfloat16), w1s_ref[...],
                preferred_element_type=jnp.float32)
    h = h + a[:, 0:1] * w1a[0:1, :] + a[:, 1:2] * w1a[1:2, :] + b1_ref[...]
    h = _layernorm(h, g1_ref[...], be1_ref[...])
    h = jnp.maximum(h, 0.0)

    # ---- Linear 2 + LayerNorm + ReLU
    h = jnp.dot(h.astype(jnp.bfloat16), w2_ref[...],
                preferred_element_type=jnp.float32) + b2_ref[...]
    h = _layernorm(h, g2_ref[...], be2_ref[...])
    h = jnp.maximum(h, 0.0)

    # ---- Linear 3 (output projection)
    y = jnp.dot(h.astype(jnp.bfloat16), w3_ref[...],
                preferred_element_type=jnp.float32) + b3_ref[...]
    o_ref[...] = y.astype(o_ref.dtype)


def _pick_batch_tile(B, tb):
    """Pick the batch tile.

    Returns either an exact single block (== B, always layout-legal) or a
    multiple of 128 (keeps the ragged-last-block DMAs layout-legal and the MXU
    LHS >= 256 rows on v6e/v7x whenever the batch allows it).  For batches
    large enough, prefer >= 2 grid steps so both v7x TensorCores get work.
    """
    if B <= tb:
        half = _round_up((B + 1) // 2, 128)
        if B > 256 and half < B:
            return half          # 2+ grid steps, each >= 256 rows
        return B                 # single exact block, no ragged rows
    return tb


def predictor_forward(state, action, params, *, tb=512, out_dtype=jnp.float32):
    """state: (B, LATENT_DIM), action: (B, ACTION_DIM) -> (B, LATENT_DIM).

    state/action may be f32 or bf16; matmuls run in bf16 with f32 accumulation
    either way.  `tb` is the batch-tile cap and must be a multiple of 128.
    """
    assert tb % 128 == 0, "tb must be a multiple of 128"
    (w1s, w1a, b1, g1, be1, w2, b2, g2, be2, w3, b3) = params

    B = state.shape[0]
    tb_eff = _pick_batch_tile(B, tb)
    n_steps = pl.cdiv(B, tb_eff)

    # Params: whole array resident in VMEM; constant index map -> no re-DMA
    # across grid steps (only the activation/output streams are pipelined).
    def full_spec(arr):
        nd = arr.ndim
        return pl.BlockSpec(arr.shape, lambda i, _nd=nd: (0,) * _nd)

    in_specs = [
        pl.BlockSpec((tb_eff, LATENT_DIM), lambda i: (i, 0)),   # state tile
        pl.BlockSpec((tb_eff, ACTION_DIM), lambda i: (i, 0)),   # action tile
        full_spec(w1s), full_spec(w1a), full_spec(b1),
        full_spec(g1), full_spec(be1),
        full_spec(w2), full_spec(b2), full_spec(g2), full_spec(be2),
        full_spec(w3), full_spec(b3),
    ]
    out_spec = pl.BlockSpec((tb_eff, LATENT_DIM), lambda i: (i, 0))

    # Advisory cost hint for XLA's scheduler around this custom call.
    flops = 2 * B * (LATENT_DIM * HIDDEN + HIDDEN * HIDDEN + HIDDEN * LATENT_DIM)
    param_bytes = sum(int(a.size) * a.dtype.itemsize
                      for a in (w1s, w1a, b1, g1, be1, w2, b2, g2, be2, w3, b3))
    act_bytes = (int(state.size) * state.dtype.itemsize
                 + int(action.size) * action.dtype.itemsize
                 + B * LATENT_DIM * jnp.dtype(out_dtype).itemsize)
    cost = pl.CostEstimate(flops=flops,
                           transcendentals=2 * B,          # one rsqrt per row per LN
                           bytes_accessed=param_bytes + act_bytes)

    return pl.pallas_call(
        predictor_kernel,
        out_shape=jax.ShapeDtypeStruct((B, LATENT_DIM), out_dtype),
        grid_spec=pltpu.PrefetchScalarGridSpec(
            num_scalar_prefetch=0,
            grid=(n_steps,),
            in_specs=in_specs,
            out_specs=out_spec,
        ),
        compiler_params=pltpu.CompilerParams(
            dimension_semantics=("parallel",),
        ),
        cost_estimate=cost,
    )(state, action, w1s, w1a, b1, g1, be1, w2, b2, g2, be2, w3, b3)


def init_params(key):
    """Deterministic synthetic parameters (shapes match the nn.Module)."""
    ks = jax.random.split(key, 6)
    in_dim = LATENT_DIM + ACTION_DIM

    def lin(kw, kb, fan_in, fan_out):
        bound = 1.0 / jnp.sqrt(fan_in)
        w = jax.random.uniform(kw, (fan_in, fan_out), jnp.float32, -bound, bound)
        b = jax.random.uniform(kb, (1, fan_out), jnp.float32, -bound, bound)
        return w, b

    w1, b1 = lin(ks[0], ks[1], in_dim, HIDDEN)
    w2, b2 = lin(ks[2], ks[3], HIDDEN, HIDDEN)
    w3, b3 = lin(ks[4], ks[5], HIDDEN, LATENT_DIM)

    # Split W1: 256 state rows feed the MXU (bf16), 2 action rows stay f32 (VPU).
    w1s = w1[:LATENT_DIM].astype(jnp.bfloat16)
    w1a = w1[LATENT_DIM:]

    g1 = jnp.ones((1, HIDDEN), jnp.float32)
    be1 = jnp.zeros((1, HIDDEN), jnp.float32)
    g2 = jnp.ones((1, HIDDEN), jnp.float32)
    be2 = jnp.zeros((1, HIDDEN), jnp.float32)

    return (w1s, w1a, b1, g1, be1,
            w2.astype(jnp.bfloat16), b2, g2, be2,
            w3.astype(jnp.bfloat16), b3)


def predictor_reference(state, action, params):
    """Pure-JAX reference (matching bf16 matmul precision) for verification."""
    (w1s, w1a, b1, g1, be1, w2, b2, g2, be2, w3, b3) = params

    def ln(h, g, b):
        mu = jnp.mean(h, axis=-1, keepdims=True)
        var = jnp.mean((h - mu) ** 2, axis=-1, keepdims=True)
        return (h - mu) / jnp.sqrt(var + LN_EPS) * g + b

    def dot_bf16(x, w):
        return jnp.dot(x.astype(jnp.bfloat16), w, preferred_element_type=jnp.float32)

    h = dot_bf16(state, w1s)
    h = h + action[:, 0:1] * w1a[0:1, :] + action[:, 1:2] * w1a[1:2, :] + b1
    h = jnp.maximum(ln(h, g1, be1), 0.0)
    h = jnp.maximum(ln(dot_bf16(h, w2) + b2, g2, be2), 0.0)
    return dot_bf16(h, w3) + b3


if __name__ == "__main__":
    key = jax.random.PRNGKey(0)
    k_state, k_action, k_params = jax.random.split(key, 3)
    params = init_params(k_params)

    # B=8   : single exact (8, 256) block.
    # B=300 : two grid steps of 256 rows, ragged last block (exercises the
    #         no-pad pl.cdiv path and both-TensorCore splitting on v7x).
    for B in (8, 300):
        state = jax.random.normal(k_state, (B, LATENT_DIM), jnp.float32)
        action = jax.random.normal(k_action, (B, ACTION_DIM), jnp.float32)
        out = jax.block_until_ready(predictor_forward(state, action, params))
        ref = predictor_reference(state, action, params)
        assert out.shape == (B, LATENT_DIM)
        assert jnp.allclose(out, ref, atol=1e-2, rtol=1e-2), f"mismatch vs reference (B={B})"

    print("KERNEL_OK")
</pallas_src>

<mosaic_0001>
module attributes {stable_mosaic.version = 11 : i64} {
  func.func @predictor_kernel(%arg0: i32, %arg1: memref<8x256xf32, #tpu.memory_space<vmem>>, %arg2: memref<8x2xf32, #tpu.memory_space<vmem>>, %arg3: memref<256x512xbf16, #tpu.memory_space<vmem>>, %arg4: memref<2x512xf32, #tpu.memory_space<vmem>>, %arg5: memref<1x512xf32, #tpu.memory_space<vmem>>, %arg6: memref<1x512xf32, #tpu.memory_space<vmem>>, %arg7: memref<1x512xf32, #tpu.memory_space<vmem>>, %arg8: memref<512x512xbf16, #tpu.memory_space<vmem>>, %arg9: memref<1x512xf32, #tpu.memory_space<vmem>>, %arg10: memref<1x512xf32, #tpu.memory_space<vmem>>, %arg11: memref<1x512xf32, #tpu.memory_space<vmem>>, %arg12: memref<512x256xbf16, #tpu.memory_space<vmem>>, %arg13: memref<1x256xf32, #tpu.memory_space<vmem>>, %arg14: memref<8x256xf32, #tpu.memory_space<vmem>>) attributes {dimension_semantics = [#tpu.dimension_semantics<parallel>], iteration_bounds = array<i64: 1>, scalar_prefetch = 0 : i64, scratch_operands = 0 : i64, tpu.core_type = #tpu.core_type<tc>, window_params = [{transform_indices = @transform_0, window_bounds = array<i64: 8, 256>}, {transform_indices = @transform_1, window_bounds = array<i64: 8, 2>}, {pipeline_mode = #tpu.pipeline_mode<synchronous>, transform_indices = @transform_2, window_bounds = array<i64: 256, 512>}, {pipeline_mode = #tpu.pipeline_mode<synchronous>, transform_indices = @transform_3, window_bounds = array<i64: 2, 512>}, {pipeline_mode = #tpu.pipeline_mode<synchronous>, transform_indices = @transform_4, window_bounds = array<i64: 1, 512>}, {pipeline_mode = #tpu.pipeline_mode<synchronous>, transform_indices = @transform_5, window_bounds = array<i64: 1, 512>}, {pipeline_mode = #tpu.pipeline_mode<synchronous>, transform_indices = @transform_6, window_bounds = array<i64: 1, 512>}, {pipeline_mode = #tpu.pipeline_mode<synchronous>, transform_indices = @transform_7, window_bounds = array<i64: 512, 512>}, {pipeline_mode = #tpu.pipeline_mode<synchronous>, transform_indices = @transform_8, window_bounds = array<i64: 1, 512>}, {pipeline_mode = #tpu.pipeline_mode<synchronous>, transform_indices = @transform_9, window_bounds = array<i64: 1, 512>}, {pipeline_mode = #tpu.pipeline_mode<synchronous>, transform_indices = @transform_10, window_bounds = array<i64: 1, 512>}, {pipeline_mode = #tpu.pipeline_mode<synchronous>, transform_indices = @transform_11, window_bounds = array<i64: 512, 256>}, {pipeline_mode = #tpu.pipeline_mode<synchronous>, transform_indices = @transform_12, window_bounds = array<i64: 1, 256>}, {transform_indices = @transform_13, window_bounds = array<i64: 8, 256>}]} {
    %c0 = arith.constant 0 : index
    %c0_0 = arith.constant 0 : index
    %0 = vector.load %arg1[%c0, %c0_0] : memref<8x256xf32, #tpu.memory_space<vmem>>, vector<8x256xf32>
    %c0_1 = arith.constant 0 : index
    %c0_2 = arith.constant 0 : index
    %1 = vector.load %arg2[%c0_1, %c0_2] : memref<8x2xf32, #tpu.memory_space<vmem>>, vector<8x2xf32>
    %c0_3 = arith.constant 0 : index
    %c0_4 = arith.constant 0 : index
    %2 = vector.load %arg4[%c0_3, %c0_4] : memref<2x512xf32, #tpu.memory_space<vmem>>, vector<2x512xf32>
    %3 = arith.truncf %0 : vector<8x256xf32> to vector<8x256xbf16>
    %c0_5 = arith.constant 0 : index
    %c0_6 = arith.constant 0 : index
    %4 = vector.load %arg3[%c0_5, %c0_6] : memref<256x512xbf16, #tpu.memory_space<vmem>>, vector<256x512xbf16>
    %cst = arith.constant dense<0.000000e+00> : vector<8x512xf32>
    %5 = tpu.matmul %3, %4, %cst {dimension_numbers = #tpu.dot_dimension_numbers<[1], [0], [0], [1], [0, 0, 1, 1], [], []>} : vector<8x256xbf16>, vector<256x512xbf16>, vector<8x512xf32> -> vector<8x512xf32>
    %6 = vector.extract_strided_slice %1 {offsets = [0, 0], sizes = [8, 1], strides = [1, 1]} : vector<8x2xf32> to vector<8x1xf32>
    %7 = vector.extract_strided_slice %2 {offsets = [0, 0], sizes = [1, 512], strides = [1, 1]} : vector<2x512xf32> to vector<1x512xf32>
    %8 = vector.broadcast %6 : vector<8x1xf32> to vector<8x512xf32>
    %9 = vector.broadcast %7 : vector<1x512xf32> to vector<8x512xf32>
    %10 = arith.mulf %8, %9 : vector<8x512xf32>
    %11 = arith.addf %5, %10 : vector<8x512xf32>
    %12 = vector.extract_strided_slice %1 {offsets = [0, 1], sizes = [8, 1], strides = [1, 1]} : vector<8x2xf32> to vector<8x1xf32>
    %13 = vector.extract_strided_slice %2 {offsets = [1, 0], sizes = [1, 512], strides = [1, 1]} : vector<2x512xf32> to vector<1x512xf32>
    %14 = vector.broadcast %12 : vector<8x1xf32> to vector<8x512xf32>
    %15 = vector.broadcast %13 : vector<1x512xf32> to vector<8x512xf32>
    %16 = arith.mulf %14, %15 : vector<8x512xf32>
    %17 = arith.addf %11, %16 : vector<8x512xf32>
    %c0_7 = arith.constant 0 : index
    %c0_8 = arith.constant 0 : index
    %18 = vector.load %arg5[%c0_7, %c0_8] : memref<1x512xf32, #tpu.memory_space<vmem>>, vector<1x512xf32>
    %19 = vector.broadcast %18 : vector<1x512xf32> to vector<8x512xf32>
    %20 = arith.addf %17, %19 : vector<8x512xf32>
    %c0_9 = arith.constant 0 : index
    %c0_10 = arith.constant 0 : index
    %21 = vector.load %arg6[%c0_9, %c0_10] : memref<1x512xf32, #tpu.memory_space<vmem>>, vector<1x512xf32>
    %c0_11 = arith.constant 0 : index
    %c0_12 = arith.constant 0 : index
    %22 = vector.load %arg7[%c0_11, %c0_12] : memref<1x512xf32, #tpu.memory_space<vmem>>, vector<1x512xf32>
    %cst_13 = arith.constant dense<0.000000e+00> : vector<8xf32>
    %23 = vector.multi_reduction <add>, %20, %cst_13 [1] : vector<8x512xf32> to vector<8xf32>
    %24 = vector.shape_cast %23 : vector<8xf32> to vector<8x1xf32>
    %cst_14 = arith.constant 0.001953125 : f32
    %25 = vector.broadcast %cst_14 : f32 to vector<8x1xf32>
    %26 = arith.mulf %24, %25 : vector<8x1xf32>
    %27 = vector.broadcast %26 : vector<8x1xf32> to vector<8x512xf32>
    %28 = arith.subf %20, %27 : vector<8x512xf32>
    %29 = arith.mulf %28, %28 : vector<8x512xf32>
    %cst_15 = arith.constant dense<0.000000e+00> : vector<8xf32>
    %30 = vector.multi_reduction <add>, %29, %cst_15 [1] : vector<8x512xf32> to vector<8xf32>
    %31 = vector.shape_cast %30 : vector<8xf32> to vector<8x1xf32>
    %cst_16 = arith.constant 0.001953125 : f32
    %32 = vector.broadcast %cst_16 : f32 to vector<8x1xf32>
    %33 = arith.mulf %31, %32 : vector<8x1xf32>
    %cst_17 = arith.constant 9.99999974E-6 : f32
    %34 = vector.broadcast %cst_17 : f32 to vector<8x1xf32>
    %35 = arith.addf %33, %34 : vector<8x1xf32>
    %36 = math.rsqrt %35 : vector<8x1xf32>
    %37 = vector.broadcast %36 : vector<8x1xf32> to vector<8x512xf32>
    %38 = arith.mulf %28, %37 : vector<8x512xf32>
    %39 = vector.broadcast %21 : vector<1x512xf32> to vector<8x512xf32>
    %40 = arith.mulf %38, %39 : vector<8x512xf32>
    %41 = vector.broadcast %22 : vector<1x512xf32> to vector<8x512xf32>
    %42 = arith.addf %40, %41 : vector<8x512xf32>
    %cst_18 = arith.constant 0.000000e+00 : f32
    %43 = vector.broadcast %cst_18 : f32 to vector<8x512xf32>
    %44 = arith.maximumf %42, %43 : vector<8x512xf32>
    %45 = arith.truncf %44 : vector<8x512xf32> to vector<8x512xbf16>
    %c0_19 = arith.constant 0 : index
    %c0_20 = arith.constant 0 : index
    %46 = vector.load %arg8[%c0_19, %c0_20] : memref<512x512xbf16, #tpu.memory_space<vmem>>, vector<512x512xbf16>
    %cst_21 = arith.constant dense<0.000000e+00> : vector<8x512xf32>
    %47 = tpu.matmul %45, %46, %cst_21 {dimension_numbers = #tpu.dot_dimension_numbers<[1], [0], [0], [1], [0, 0, 1, 1], [], []>} : vector<8x512xbf16>, vector<512x512xbf16>, vector<8x512xf32> -> vector<8x512xf32>
    %c0_22 = arith.constant 0 : index
    %c0_23 = arith.constant 0 : index
    %48 = vector.load %arg9[%c0_22, %c0_23] : memref<1x512xf32, #tpu.memory_space<vmem>>, vector<1x512xf32>
    %49 = vector.broadcast %48 : vector<1x512xf32> to vector<8x512xf32>
    %50 = arith.addf %47, %49 : vector<8x512xf32>
    %c0_24 = arith.constant 0 : index
    %c0_25 = arith.constant 0 : index
    %51 = vector.load %arg10[%c0_24, %c0_25] : memref<1x512xf32, #tpu.memory_space<vmem>>, vector<1x512xf32>
    %c0_26 = arith.constant 0 : index
    %c0_27 = arith.constant 0 : index
    %52 = vector.load %arg11[%c0_26, %c0_27] : memref<1x512xf32, #tpu.memory_space<vmem>>, vector<1x512xf32>
    %cst_28 = arith.constant dense<0.000000e+00> : vector<8xf32>
    %53 = vector.multi_reduction <add>, %50, %cst_28 [1] : vector<8x512xf32> to vector<8xf32>
    %54 = vector.shape_cast %53 : vector<8xf32> to vector<8x1xf32>
    %cst_29 = arith.constant 0.001953125 : f32
    %55 = vector.broadcast %cst_29 : f32 to vector<8x1xf32>
    %56 = arith.mulf %54, %55 : vector<8x1xf32>
    %57 = vector.broadcast %56 : vector<8x1xf32> to vector<8x512xf32>
    %58 = arith.subf %50, %57 : vector<8x512xf32>
    %59 = arith.mulf %58, %58 : vector<8x512xf32>
    %cst_30 = arith.constant dense<0.000000e+00> : vector<8xf32>
    %60 = vector.multi_reduction <add>, %59, %cst_30 [1] : vector<8x512xf32> to vector<8xf32>
    %61 = vector.shape_cast %60 : vector<8xf32> to vector<8x1xf32>
    %cst_31 = arith.constant 0.001953125 : f32
    %62 = vector.broadcast %cst_31 : f32 to vector<8x1xf32>
    %63 = arith.mulf %61, %62 : vector<8x1xf32>
    %cst_32 = arith.constant 9.99999974E-6 : f32
    %64 = vector.broadcast %cst_32 : f32 to vector<8x1xf32>
    %65 = arith.addf %63, %64 : vector<8x1xf32>
    %66 = math.rsqrt %65 : vector<8x1xf32>
    %67 = vector.broadcast %66 : vector<8x1xf32> to vector<8x512xf32>
    %68 = arith.mulf %58, %67 : vector<8x512xf32>
    %69 = vector.broadcast %51 : vector<1x512xf32> to vector<8x512xf32>
    %70 = arith.mulf %68, %69 : vector<8x512xf32>
    %71 = vector.broadcast %52 : vector<1x512xf32> to vector<8x512xf32>
    %72 = arith.addf %70, %71 : vector<8x512xf32>
    %cst_33 = arith.constant 0.000000e+00 : f32
    %73 = vector.broadcast %cst_33 : f32 to vector<8x512xf32>
    %74 = arith.maximumf %72, %73 : vector<8x512xf32>
    %75 = arith.truncf %74 : vector<8x512xf32> to vector<8x512xbf16>
    %c0_34 = arith.constant 0 : index
    %c0_35 = arith.constant 0 : index
    %76 = vector.load %arg12[%c0_34, %c0_35] : memref<512x256xbf16, #tpu.memory_space<vmem>>, vector<512x256xbf16>
    %cst_36 = arith.constant dense<0.000000e+00> : vector<8x256xf32>
    %77 = tpu.matmul %75, %76, %cst_36 {dimension_numbers = #tpu.dot_dimension_numbers<[1], [0], [0], [1], [0, 0, 1, 1], [], []>} : vector<8x512xbf16>, vector<512x256xbf16>, vector<8x256xf32> -> vector<8x256xf32>
    %c0_37 = arith.constant 0 : index
    %c0_38 = arith.constant 0 : index
    %78 = vector.load %arg13[%c0_37, %c0_38] : memref<1x256xf32, #tpu.memory_space<vmem>>, vector<1x256xf32>
    %79 = vector.broadcast %78 : vector<1x256xf32> to vector<8x256xf32>
    %80 = arith.addf %77, %79 : vector<8x256xf32>
    %c0_39 = arith.constant 0 : index
    %c0_40 = arith.constant 0 : index
    %81 = vector.load %arg14[%c0_39, %c0_40] : memref<8x256xf32, #tpu.memory_space<vmem>>, vector<8x256xf32>
    tpu.vector_store %arg14[%c0_39, %c0_40], %80 {strides = array<i32>} : memref<8x256xf32, #tpu.memory_space<vmem>>, vector<8x256xf32>,
    return
  }
  func.func @transform_0(%arg0: i32) -> (i32, i32) {
    %c0_i32 = arith.constant 0 : i32
    %c0_i32_0 = arith.constant 0 : i32
    return %arg0, %c0_i32 : i32, i32
  }
  func.func @transform_1(%arg0: i32) -> (i32, i32) {
    %c0_i32 = arith.constant 0 : i32
    %c0_i32_0 = arith.constant 0 : i32
    return %arg0, %c0_i32 : i32, i32
  }
  func.func @transform_2(%arg0: i32) -> (i32, i32) {
    %c0_i32 = arith.constant 0 : i32
    %c0_i32_0 = arith.constant 0 : i32
    %c0_i32_1 = arith.constant 0 : i32
    return %c0_i32, %c0_i32_0 : i32, i32
  }
  func.func @transform_3(%arg0: i32) -> (i32, i32) {
    %c0_i32 = arith.constant 0 : i32
    %c0_i32_0 = arith.constant 0 : i32
    %c0_i32_1 = arith.constant 0 : i32
    return %c0_i32, %c0_i32_0 : i32, i32
  }
  func.func @transform_4(%arg0: i32) -> (i32, i32) {
    %c0_i32 = arith.constant 0 : i32
    %c0_i32_0 = arith.constant 0 : i32
    %c0_i32_1 = arith.constant 0 : i32
    return %c0_i32, %c0_i32_0 : i32, i32
  }
  func.func @transform_5(%arg0: i32) -> (i32, i32) {
    %c0_i32 = arith.constant 0 : i32
    %c0_i32_0 = arith.constant 0 : i32
    %c0_i32_1 = arith.constant 0 : i32
    return %c0_i32, %c0_i32_0 : i32, i32
  }
  func.func @transform_6(%arg0: i32) -> (i32, i32) {
    %c0_i32 = arith.constant 0 : i32
    %c0_i32_0 = arith.constant 0 : i32
    %c0_i32_1 = arith.constant 0 : i32
    return %c0_i32, %c0_i32_0 : i32, i32
  }
  func.func @transform_7(%arg0: i32) -> (i32, i32) {
    %c0_i32 = arith.constant 0 : i32
    %c0_i32_0 = arith.constant 0 : i32
    %c0_i32_1 = arith.constant 0 : i32
    return %c0_i32, %c0_i32_0 : i32, i32
  }
  func.func @transform_8(%arg0: i32) -> (i32, i32) {
    %c0_i32 = arith.constant 0 : i32
    %c0_i32_0 = arith.constant 0 : i32
    %c0_i32_1 = arith.constant 0 : i32
    return %c0_i32, %c0_i32_0 : i32, i32
  }
  func.func @transform_9(%arg0: i32) -> (i32, i32) {
    %c0_i32 = arith.constant 0 : i32
    %c0_i32_0 = arith.constant 0 : i32
    %c0_i32_1 = arith.constant 0 : i32
    return %c0_i32, %c0_i32_0 : i32, i32
  }
  func.func @transform_10(%arg0: i32) -> (i32, i32) {
    %c0_i32 = arith.constant 0 : i32
    %c0_i32_0 = arith.constant 0 : i32
    %c0_i32_1 = arith.constant 0 : i32
    return %c0_i32, %c0_i32_0 : i32, i32
  }
  func.func @transform_11(%arg0: i32) -> (i32, i32) {
    %c0_i32 = arith.constant 0 : i32
    %c0_i32_0 = arith.constant 0 : i32
    %c0_i32_1 = arith.constant 0 : i32
    return %c0_i32, %c0_i32_0 : i32, i32
  }
  func.func @transform_12(%arg0: i32) -> (i32, i32) {
    %c0_i32 = arith.constant 0 : i32
    %c0_i32_0 = arith.constant 0 : i32
    %c0_i32_1 = arith.constant 0 : i32
    return %c0_i32, %c0_i32_0 : i32, i32
  }
  func.func @transform_13(%arg0: i32) -> (i32, i32) {
    %c0_i32 = arith.constant 0 : i32
    %c0_i32_0 = arith.constant 0 : i32
    return %arg0, %c0_i32 : i32, i32
  }
}

</mosaic_0001>

<bundles_post_ra>
// kernel: tpu_custom_call.1
= control target key start
LH: loop header
LB: loop body
LE: loop exit
PB: predicated region body
PF: predicated region fallthrough
CT: control target
= control target key end

     0   :  { %18 = vsyncpa [#allocation3], 0  ;;  %s3366_s0 = inlined_call_operand.hbm [shape: f32[8,256], index: 0, kind: input, shape index: {}]   ;;  %s3367_s1 = inlined_call_operand.vmem [shape: f32[8,2], index: 1, kind: input, shape index: {}]   ;;  %s3368_s2 = inlined_call_operand.hbm [shape: bf16[256,512], index: 2, kind: input, shape index: {}]   ;;  %s3369_s3 = inlined_call_operand.vmem [shape: f32[2,512], index: 3, kind: input, shape index: {}]   ;;  %s3370_s4 = inlined_call_operand.vmem [shape: f32[1,512], index: 4, kind: input, shape index: {}]   ;;  %s3371_s5 = inlined_call_operand.vmem [shape: f32[1,512], index: 5, kind: input, shape index: {}]   ;;  %s3372_s6 = inlined_call_operand.vmem [shape: f32[1,512], index: 6, kind: input, shape index: {}]   ;;  %s3373_s7 = inlined_call_operand.hbm [shape: bf16[512,512], index: 7, kind: input, shape index: {}]   ;;  %s3374_s8 = inlined_call_operand.vmem [shape: f32[1,512], index: 8, kind: input, shape index: {}]   ;;  %s3375_s9 = inlined_call_operand.hbm [shape: f32[1,512], index: 9, kind: input, shape index: {}]   ;;  %s3376_s10 = inlined_call_operand.vmem [shape: f32[1,512], index: 10, kind: input, shape index: {}]   ;;  %s3377_s11 = inlined_call_operand.hbm [shape: bf16[512,256], index: 11, kind: input, shape index: {}]   ;;  %s3378_s12 = inlined_call_operand.vmem [shape: f32[1,256], index: 12, kind: input, shape index: {}]   ;;  %s3379_s13 = inlined_call_operand.hbm [shape: f32[8,256], index: 13, kind: output, shape index: {}]  }
   0x1   :  { %19 = vsyncpa [#allocation6], 0 }
   0x2   :  { %20 = vsyncpa [#allocation9], 0 }
   0x3   :  { %21 = vsyncpa [#allocation4], 0  ;;  %s3110_s25 = smov [#allocation5]  }
   0x4   :  { %s39_s26 = sshll.u32 %s3110_s25, 4  ;;  %s40_s26 = int_to_ptr.vmem [resolvable:$true] %s39_s26 }
   0x5   :  { %s2990_s27 = scalar_lea.vmem %s40_s26, 8192  ;;  %p2995_p1 = scmp.lt.s32.totalorder %s40_s26, %s40_s26 }
   0x6   :  { %p2991_p0 = scmp.ne.s32.totalorder %s40_s26, %s2990_s27  ;;  %p2996_p2 = scmp.lt.s32.totalorder %s2990_s27, %s2990_s27 }
   0x8   :  { %p2997_p3 = por %p2996_p2, %p2995_p1 }
   0xa   :  { %p2998_p4 = pnand %p2997_p3, %p2991_p0 }
   0xc   :  { %3001 = shalt.err (!%p2998_p4)
}
   0xd   :  { %s3111_s28 = smov 256   ;;  %s3112_s29 = smov 16  }
   0xe   :  { %45 = dma.hbm_to_vmem [thread:$0]  %s3368_s2, 8192, %s40_s26, [#allocation6], %s3111_s28, %s3111_s28, %s3112_s29  }
   0xf   :  { %s3113_s15 = smov [#allocation8]   ;;  %s3114_s17 = smov [#allocation2]  }
  0x10   :  { %s74_s16 = sshll.u32 %s3113_s15, 4  ;;  %s28_s18 = sshll.u32 %s3114_s17, 4  ;;  %s75_s16 = int_to_ptr.vmem [resolvable:$true] %s74_s16  ;;  %s29_s18 = int_to_ptr.vmem [resolvable:$true] %s28_s18 }
  0x11   :  { %s3010_s19 = scalar_lea.vmem %s75_s16, 64  ;;  %p3015_p6 = scmp.lt.s32.totalorder %s75_s16, %s75_s16 }
  0x12   :  { %p3011_p5 = scmp.ne.s32.totalorder %s75_s16, %s3010_s19  ;;  %p3016_p7 = scmp.lt.s32.totalorder %s3010_s19, %s3010_s19 }
  0x14   :  { %p3017_p8 = por %p3016_p7, %p3015_p6 }
  0x16   :  { %p3018_p9 = pnand %p3017_p8, %p3011_p5 }
  0x18   :  { %3021 = shalt.err (!%p3018_p9)
}
  0x19   :  { %77 = dma.hbm_to_vmem [thread:$0]  %s3375_s9, 64, %s75_s16, [#allocation9]  }
  0x1a   :  { %s3030_s22 = scalar_lea.vmem %s29_s18, 256  ;;  %p3035_p11 = scmp.lt.s32.totalorder %s29_s18, %s29_s18 }
  0x1b   :  { %p3031_p10 = scmp.ne.s32.totalorder %s29_s18, %s3030_s22  ;;  %p3036_p12 = scmp.lt.s32.totalorder %s3030_s22, %s3030_s22 }
  0x1d   :  { %p3037_p13 = por %p3036_p12, %p3035_p11 }
  0x1f   :  { %p3038_p0 = pnand %p3037_p13, %p3031_p10 }
  0x21   :  { %3041 = shalt.err (!%p3038_p0)
}
  0x22   :  { %31 = dma.hbm_to_vmem [thread:$0]  %s3366_s0, 256, %s29_s18, [#allocation3]  }
  0x23   :  { %s3115_s24 = smov [#allocation7]   ;;  %s3116_s26 = smov [#allocation10]  }
  0x24   :  { %s59_s25 = sshll.u32 %s3115_s24, 4  ;;  %s85_s27 = sshll.u32 %s3116_s26, 4  ;;  %s60_s25 = int_to_ptr.vmem [resolvable:$true] %s59_s25  ;;  %s86_s27 = int_to_ptr.vmem [resolvable:$true] %s85_s27 }
  0x25   :  { %s3050_s30 = scalar_lea.vmem %s60_s25, 16384  ;;  %p3055_p2 = scmp.lt.s32.totalorder %s60_s25, %s60_s25 }
  0x26   :  { %p3051_p1 = scmp.ne.s32.totalorder %s60_s25, %s3050_s30  ;;  %p3056_p3 = scmp.lt.s32.totalorder %s3050_s30, %s3050_s30 }
  0x28   :  { %p3057_p4 = por %p3056_p3, %p3055_p2 }
  0x2a   :  { %p3058_p5 = pnand %p3057_p4, %p3051_p1 }
  0x2c   :  { %3061 = shalt.err (!%p3058_p5)
}
  0x2d   :  { %65 = dma.hbm_to_vmem [thread:$0]  %s3373_s7, 16384, %s60_s25, [#allocation6], %s3111_s28, %s3111_s28, %s3112_s29  }
  0x2e   :  { %s3070_s0 = scalar_lea.vmem %s86_s27, 8192  ;;  %p3075_p7 = scmp.lt.s32.totalorder %s86_s27, %s86_s27 }
  0x2f   :  { %p3071_p6 = scmp.ne.s32.totalorder %s86_s27, %s3070_s0  ;;  %p3076_p8 = scmp.lt.s32.totalorder %s3070_s0, %s3070_s0 }
  0x31   :  { %p3077_p9 = por %p3076_p8, %p3075_p7 }
  0x33   :  { %p3078_p10 = pnand %p3077_p9, %p3071_p6 }
  0x35   :  { %3081 = shalt.err (!%p3078_p10)
}
  0x36   :  { %s3117_s15 = smov 128   ;;  %s3118_s16 = smov 8  }
  0x37   :  { %91 = dma.hbm_to_vmem [thread:$0]  %s3377_s11, 8192, %s86_s27, [#allocation9], %s3117_s15, %s3117_s15, %s3118_s16  }
  0x38   :  { %3102 = dma.done.wait [#allocation3], 256  }
  0x39   :  { %3103 = vsyncadd [#allocation3], 4294967040 }
  0x3a   :  { %3104 = dma.done.wait [#allocation6], 24576  }
  0x3b   :  { %3105 = vsyncadd [#allocation6], 4294942720 }
  0x3c   :  { %3106 = dma.done.wait [#allocation9], 8256  }
  0x3d   :  { %3107 = vsyncadd [#allocation9], 4294959040  ;;  %v3119_v0 = vmov 0   ;;  %v2594_v1 = vld [vmem:[#allocation5 + $0xe4] ss:$16 sps:$4 sm:$0xff]   ;;  %v110_v49 = vld [vmem:[#allocation2 + $0x8] sm:$0xff] }
  0x3e   :  { %2592 = vset.pattern.permute.xlu0 %v3119_v0  ;;  %v2596_v2 = vld [vmem:[#allocation5 + $0xec] ss:$16 sps:$4 sm:$0xff]   ;;  %545 = vmatprep.subr.bf16.mxu0 %v2594_v1  ;;  %v2598_v3 = vld [vmem:[#allocation5 + $0xe0] ss:$16 sps:$4 sm:$0xff]   ;;  %v2599_v4 = vld [vmem:[#allocation5 + $0xe8] ss:$16 sps:$4 sm:$0xff]   ;;  %v114_v52 = vpack.c.bf16 %v110_v49, %v110_v49 }
  0x3f   :  { %586 = vmatprep.subr.bf16.mxu1 %v2596_v2  ;;  %v2600_v5 = vld [vmem:[#allocation5 + $0xc4] ss:$16 sps:$4 sm:$0xff]   ;;  %546 = vmatpush1.bf16.msra.mxu0 %v2598_v3  ;;  %v2602_v6 = vld [vmem:[#allocation5 + $0xcc] ss:$16 sps:$4 sm:$0xff]   ;;  %v2604_v7 = vld [vmem:[#allocation5 + $0xc0] ss:$16 sps:$4 sm:$0xff]  }
  0x40   :  { %587 = vmatpush1.bf16.msra.mxu1 %v2599_v4  ;;  %547 = vmatprep.subr.bf16.mxu0 %v2600_v5  ;;  %v2605_v8 = vld [vmem:[#allocation5 + $0xc8] ss:$16 sps:$4 sm:$0xff]   ;;  %v2606_v9 = vld [vmem:[#allocation5 + $0xa4] ss:$16 sps:$4 sm:$0xff]   ;;  %v2608_v10 = vld [vmem:[#allocation5 + $0xac] ss:$16 sps:$4 sm:$0xff]  }
  0x41   :  { %588 = vmatprep.subr.bf16.mxu1 %v2602_v6  ;;  %v2610_v11 = vld [vmem:[#allocation5 + $0xa0] ss:$16 sps:$4 sm:$0xff]   ;;  %v2611_v12 = vld [vmem:[#allocation5 + $0xa8] ss:$16 sps:$4 sm:$0xff]   ;;  %v2612_v13 = vld [vmem:[#allocation5 + $0x84] ss:$16 sps:$4 sm:$0xff]   ;;  %577 = vmatprep.mubr.bf16.mxu0 %v114_v52 }
  0x42   :  { %v2614_v14 = vld [vmem:[#allocation5 + $0x8c] ss:$16 sps:$4 sm:$0xff]   ;;  %v2616_v15 = vld [vmem:[#allocation5 + $0x80] ss:$16 sps:$4 sm:$0xff]   ;;  %v2617_v16 = vld [vmem:[#allocation5 + $0x88] ss:$16 sps:$4 sm:$0xff]   ;;  %618 = vmatprep.mubr.bf16.mxu1 %v114_v52 }
  0x43   :  { %548 = vmatpush1.bf16.msra.mxu0 %v2604_v7  ;;  %v2618_v17 = vld [vmem:[#allocation5 + $0x64] ss:$16 sps:$4 sm:$0xff]   ;;  %v2620_v18 = vld [vmem:[#allocation5 + $0x6c] ss:$16 sps:$4 sm:$0xff]   ;;  %v2622_v19 = vld [vmem:[#allocation5 + $0x60] ss:$16 sps:$4 sm:$0xff]   ;;  %v185_v7 = vlaneseq }
  0x44   :  { %589 = vmatpush1.bf16.msra.mxu1 %v2605_v8  ;;  %549 = vmatprep.subr.bf16.mxu0 %v2606_v9  ;;  %v2623_v20 = vld [vmem:[#allocation5 + $0x68] ss:$16 sps:$4 sm:$0xff]   ;;  %v2624_v21 = vld [vmem:[#allocation5 + $0x44] ss:$16 sps:$4 sm:$0xff]   ;;  %v2626_v22 = vld [vmem:[#allocation5 + $0x4c] ss:$16 sps:$4 sm:$0xff]  }
  0x45   :  { %590 = vmatprep.subr.bf16.mxu1 %v2608_v10  ;;  %v2628_v23 = vld [vmem:[#allocation5 + $0x40] ss:$16 sps:$4 sm:$0xff]   ;;  %v2629_v24 = vld [vmem:[#allocation5 + $0x48] ss:$16 sps:$4 sm:$0xff]   ;;  %v2630_v25 = vld [vmem:[#allocation5 + $0x24] ss:$16 sps:$4 sm:$0xff]  }
  0x46   :  { %v2632_v26 = vld [vmem:[#allocation5 + $0x2c] ss:$16 sps:$4 sm:$0xff]   ;;  %v2634_v27 = vld [vmem:[#allocation5 + $0x20] ss:$16 sps:$4 sm:$0xff]   ;;  %v2635_v28 = vld [vmem:[#allocation5 + $0x28] ss:$16 sps:$4 sm:$0xff]  }
  0x47   :  { %550 = vmatpush1.bf16.msra.mxu0 %v2610_v11  ;;  %v2636_v29 = vld [vmem:[#allocation5 + $0x4] ss:$16 sps:$4 sm:$0xff]   ;;  %v2638_v30 = vld [vmem:[#allocation5 + $0xc] ss:$16 sps:$4 sm:$0xff]   ;;  %v2640_v31 = vld [vmem:[#allocation5] ss:$16 sps:$4 sm:$0xff]  }
  0x48   :  { %591 = vmatpush1.bf16.msra.mxu1 %v2611_v12  ;;  %551 = vmatprep.subr.bf16.mxu0 %v2612_v13  ;;  %v2641_v32 = vld [vmem:[#allocation5 + $0x8] ss:$16 sps:$4 sm:$0xff]   ;;  %v2642_v33 = vld [vmem:[#allocation5 + $0x1e4] ss:$16 sps:$4 sm:$0xff]   ;;  %v2644_v34 = vld [vmem:[#allocation5 + $0x1ec] ss:$16 sps:$4 sm:$0xff]  }
  0x49   :  { %592 = vmatprep.subr.bf16.mxu1 %v2614_v14  ;;  %v2646_v35 = vld [vmem:[#allocation5 + $0x1e0] ss:$16 sps:$4 sm:$0xff]   ;;  %v2647_v36 = vld [vmem:[#allocation5 + $0x1e8] ss:$16 sps:$4 sm:$0xff]   ;;  %v2648_v37 = vld [vmem:[#allocation5 + $0x1c4] ss:$16 sps:$4 sm:$0xff]  }
  0x4a   :  { %v2650_v38 = vld [vmem:[#allocation5 + $0x1cc] ss:$16 sps:$4 sm:$0xff]   ;;  %v2652_v39 = vld [vmem:[#allocation5 + $0x1c0] ss:$16 sps:$4 sm:$0xff]   ;;  %v2653_v40 = vld [vmem:[#allocation5 + $0x1c8] ss:$16 sps:$4 sm:$0xff]  }
  0x4b   :  { %552 = vmatpush1.bf16.msra.mxu0 %v2616_v15  ;;  %v2654_v41 = vld [vmem:[#allocation5 + $0x1a4] ss:$16 sps:$4 sm:$0xff]   ;;  %v2656_v42 = vld [vmem:[#allocation5 + $0x1ac] ss:$16 sps:$4 sm:$0xff]   ;;  %v2658_v43 = vld [vmem:[#allocation5 + $0x1a0] ss:$16 sps:$4 sm:$0xff]  }
  0x4c   :  { %593 = vmatpush1.bf16.msra.mxu1 %v2617_v16  ;;  %553 = vmatprep.subr.bf16.mxu0 %v2618_v17  ;;  %v2659_v44 = vld [vmem:[#allocation5 + $0x1a8] ss:$16 sps:$4 sm:$0xff]   ;;  %v2660_v45 = vld [vmem:[#allocation5 + $0x184] ss:$16 sps:$4 sm:$0xff]   ;;  %v2662_v46 = vld [vmem:[#allocation5 + $0x18c] ss:$16 sps:$4 sm:$0xff]  }
  0x4d   :  { %594 = vmatprep.subr.bf16.mxu1 %v2620_v18  ;;  %v2664_v47 = vld [vmem:[#allocation5 + $0x180] ss:$16 sps:$4 sm:$0xff]   ;;  %v2665_v48 = vld [vmem:[#allocation5 + $0x188] ss:$16 sps:$4 sm:$0xff]   ;;  %v2666_v50 = vld [vmem:[#allocation5 + $0x164] ss:$16 sps:$4 sm:$0xff]  }
  0x4e   :  { %v2668_v51 = vld [vmem:[#allocation5 + $0x16c] ss:$16 sps:$4 sm:$0xff]   ;;  %v111_v53 = vld [vmem:[%s3367_s1] sm:$0xff]  ;;  %v2671_v55 = vld [vmem:[#allocation5 + $0x168] ss:$16 sps:$4 sm:$0xff]   ;;  %v3120_v62 = vmov 1  }
  0x4f   :  { %554 = vmatpush1.bf16.msra.mxu0 %v2622_v19  ;;  %v2670_v54 = vld [vmem:[#allocation5 + $0x160] ss:$16 sps:$4 sm:$0xff]   ;;  %v2672_v56 = vld [vmem:[#allocation5 + $0x144] ss:$16 sps:$4 sm:$0xff]   ;;  %181 = vperm.xlu0 %2592, %v111_v53   ;;  %v2674_v57 = vld [vmem:[#allocation5 + $0x14c] ss:$16 sps:$4 sm:$0xff]  }
  0x50   :  { %595 = vmatpush1.bf16.msra.mxu1 %v2623_v20  ;;  %555 = vmatprep.subr.bf16.mxu0 %v2624_v21  ;;  %v2676_v58 = vld [vmem:[#allocation5 + $0x140] ss:$16 sps:$4 sm:$0xff]   ;;  %v2677_v59 = vld [vmem:[#allocation5 + $0x148] ss:$16 sps:$4 sm:$0xff]   ;;  %v2678_v60 = vld [vmem:[#allocation5 + $0x124] ss:$16 sps:$4 sm:$0xff]  }
  0x51   :  { %596 = vmatprep.subr.bf16.mxu1 %v2626_v22  ;;  %v2680_v61 = vld [vmem:[#allocation5 + $0x12c] ss:$16 sps:$4 sm:$0xff]   ;;  %v2682_v63 = vld [vmem:[#allocation5 + $0x120] ss:$16 sps:$4 sm:$0xff]   ;;  %v2683_v0 = vld [vmem:[#allocation5 + $0x128] ss:$16 sps:$4 sm:$0xff]  }
  0x52   :  { %v2684_v1 = vld [vmem:[#allocation5 + $0x104] ss:$16 sps:$4 sm:$0xff]   ;;  %v2686_v2 = vld [vmem:[#allocation5 + $0x10c] ss:$16 sps:$4 sm:$0xff]   ;;  %v2688_v3 = vld [vmem:[#allocation5 + $0x100] ss:$16 sps:$4 sm:$0xff]  }
  0x53   :  { %556 = vmatpush1.bf16.msra.mxu0 %v2628_v23  ;;  %2593 = vset.pattern.permute.xlu0 %v3120_v62  ;;  %v2689_v4 = vld [vmem:[#allocation5 + $0x108] ss:$16 sps:$4 sm:$0xff]   ;;  %v109_v5 = vld [vmem:[#allocation2] sm:$0xff]  ;;  %v186_v8 = vshrl.u32 %v185_v7, 7  ;;  %s3121_s23 = smov [#allocation11]  }
  0x54   :  { %597 = vmatpush1.bf16.msra.mxu1 %v2629_v24  ;;  %557 = vmatprep.subr.bf16.mxu0 %v2630_v25  ;;  %v113_v6 = vpack.c.bf16 %v109_v5, %v109_v5  ;;  %v112_v11 = vld [vmem:[%s3369_s3] sm:$0xff]  ;;  %s2313_s24 = sshll.u32 %s3121_s23, 4  ;;  %s2314_s24 = int_to_ptr.vmem [resolvable:$true] %s2313_s24 }
  0x55   :  { %598 = vmatprep.subr.bf16.mxu1 %v2632_v26  ;;  %628 = vperm.xlu0 %2593, %v111_v53   ;;  %v3216_v9 = vsub.s32 0, %v186_v8  ;;  %v195_v10 = vsub.s32 4, %v186_v8  ;;  %v3221_v12 = vsub.s32 1, %v186_v8  ;;  %v3223_v13 = vsub.s32 2, %v186_v8  ;;  %p3087_p12 = scmp.lt.s32.totalorder %s2314_s24, %s2314_s24 }
  0x56   :  { %v199_v14 = vsub.s32 6, %v186_v8  ;;  %v641_v17 = vsub.s32 5, %v186_v8  ;;  %v3226_v18 = vsub.s32 3, %v186_v8  ;;  %v645_v21 = vsub.s32 7, %v186_v8  ;;  %v2690_v8 = vld [vmem:[#allocation7 + $0xe0] ss:$16 sps:$4 sm:$0xff]  }
  0x57   :  { %558 = vmatpush1.bf16.msra.mxu0 %v2634_v27  ;;  %v188_v15 = vrot.slane %v112_v11, %v3216_v9  ;;  %v196_v16 = vrot.slane %v112_v11, %v195_v10  ;;  %v634_v20 = vrot.slane %v112_v11, %v3221_v12  ;;  %v192_v22 = vrot.slane %v112_v11, %v3223_v13  ;;  %v2692_v10 = vld [vmem:[#allocation7 + $0xe4] ss:$16 sps:$4 sm:$0xff]  }
  0x58   :  { %599 = vmatpush1.bf16.msra.mxu1 %v2635_v28  ;;  %559 = vmatprep.subr.bf16.mxu0 %v2636_v29  ;;  %v200_v23 = vrot.slane %v112_v11, %v199_v14  ;;  %v642_v26 = vrot.slane %v112_v11, %v641_v17  ;;  %v638_v27 = vrot.slane %v112_v11, %v3226_v18  ;;  %v2695_v14 = vld [vmem:[#allocation7 + $0x2e4] ss:$16 sps:$4 sm:$0xff]   ;;  %v2696_v17 = vld [vmem:[#allocation7 + $0xc0] ss:$16 sps:$4 sm:$0xff]  }
  0x59   :  { %600 = vmatprep.subr.bf16.mxu1 %v2638_v30  ;;  %v208_v24 = vrot.slane %v188_v15, %v3216_v9  ;;  %v216_v25 = vrot.slane %v196_v16, %v3216_v9  ;;  %v654_v28 = vrot.slane %v634_v20, %v3221_v12  ;;  %v646_v29 = vrot.slane %v112_v11, %v645_v21  ;;  %v2693_v11 = vld [vmem:[#allocation7 + $0x2e0] ss:$16 sps:$4 sm:$0xff]   ;;  %v2698_v15 = vld [vmem:[#allocation7 + $0xc4] ss:$16 sps:$4 sm:$0xff]  }
  0x5a   :  { %v2701_v16 = vld [vmem:[#allocation7 + $0x2c4] ss:$16 sps:$4 sm:$0xff]  }
  0x5b   :  { %560 = vmatpush1.bf16.msra.mxu0 %v2640_v31  ;;  %v212_v31 = vrot.slane %v192_v22, %v3216_v9  ;;  %v2704_v20 = vld [vmem:[#allocation7 + $0xa4] ss:$16 sps:$4 sm:$0xff]   ;;  %v2702_v22 = vld [vmem:[#allocation7 + $0xa0] ss:$16 sps:$4 sm:$0xff]  }
  0x5c   :  { %601 = vmatpush1.bf16.msra.mxu1 %v2641_v32  ;;  %561 = vmatprep.subr.bf16.mxu0 %v2642_v33  ;;  %v220_v32 = vrot.slane %v200_v23, %v3216_v9  ;;  %v2707_v21 = vld [vmem:[#allocation7 + $0x2a4] ss:$16 sps:$4 sm:$0xff]   ;;  %v2705_v23 = vld [vmem:[#allocation7 + $0x2a0] ss:$16 sps:$4 sm:$0xff]  }
  0x5d   :  { %602 = vmatprep.subr.bf16.mxu1 %v2644_v34 }
  0x5f   :  { %562 = vmatpush2.bf16.msra.mxu0 %v2646_v35  ;;  %v662_v35 = vrot.slane %v642_v26, %v3221_v12  ;;  %v2708_v26 = vld [vmem:[#allocation7 + $0x80] ss:$16 sps:$4 sm:$0xff]  }
  0x60   :  { %603 = vmatpush2.bf16.msra.mxu1 %v2647_v36  ;;  %563 = vmatprep.subr.bf16.mxu0 %v2648_v37  ;;  %v658_v36 = vrot.slane %v638_v27, %v3221_v12  ;;  %v2711_v27 = vld [vmem:[#allocation7 + $0x280] ss:$16 sps:$4 sm:$0xff]  }
  0x61   :  { %604 = vmatprep.subr.bf16.mxu1 %v2650_v38  ;;  %v675_v38 = vld [vmem:[%s3370_s4] sm:$0xf] }
  0x63   :  { %564 = vmatpush2.bf16.msra.mxu0 %v2652_v39  ;;  %v666_v39 = vrot.slane %v646_v29, %v3221_v12  ;;  %v2719_v29 = vld [vmem:[#allocation7 + $0x264] ss:$16 sps:$4 sm:$0xff]  }
  0x64   :  { %605 = vmatpush2.bf16.msra.mxu1 %v2653_v40  ;;  %565 = vmatprep.subr.bf16.mxu0 %v2654_v41 }
  0x65   :  { %606 = vmatprep.subr.bf16.mxu1 %v2656_v42 }
  0x67   :  { %566 = vmatpush2.bf16.msra.mxu0 %v2658_v43 }
  0x68   :  { %607 = vmatpush2.bf16.msra.mxu1 %v2659_v44  ;;  %567 = vmatprep.subr.bf16.mxu0 %v2660_v45 }
  0x69   :  { %608 = vmatprep.subr.bf16.mxu1 %v2662_v46 }
  0x6b   :  { %568 = vmatpush2.bf16.msra.mxu0 %v2664_v47 }
  0x6c   :  { %609 = vmatpush2.bf16.msra.mxu1 %v2665_v48  ;;  %569 = vmatprep.subr.bf16.mxu0 %v2666_v50  ;;  %v680_v48 = vrot.slane %v675_v38, %v3216_v9  ;;  %v684_v50 = vrot.slane %v675_v38, %v3221_v12 }
  0x6d   :  { %610 = vmatprep.subr.bf16.mxu1 %v2668_v51 }
  0x6f   :  { %570 = vmatpush2.bf16.msra.mxu0 %v2670_v54 }
  0x70   :  { %611 = vmatpush2.bf16.msra.mxu1 %v2671_v55  ;;  %571 = vmatprep.subr.bf16.mxu0 %v2672_v56 }
  0x71   :  { %612 = vmatprep.subr.bf16.mxu1 %v2674_v57 }
  0x73   :  { %572 = vmatpush2.bf16.msra.mxu0 %v2676_v58 }
  0x74   :  { %613 = vmatpush2.bf16.msra.mxu1 %v2677_v59  ;;  %573 = vmatprep.subr.bf16.mxu0 %v2678_v60  ;;  %v688_v60 = vrot.slane %v675_v38, %v3223_v13 }
  0x75   :  { %614 = vmatprep.subr.bf16.mxu1 %v2680_v61 }
  0x77   :  { %574 = vmatpush2.bf16.msra.mxu0 %v2682_v63 }
  0x78   :  { %615 = vmatpush2.bf16.msra.mxu1 %v2683_v0  ;;  %575 = vmatprep.subr.bf16.mxu0 %v2684_v1 }
  0x79   :  { %616 = vmatprep.subr.bf16.mxu1 %v2686_v2  ;;  %v692_v2 = vrot.slane %v675_v38, %v3226_v18  ;;  %v2726_v38 = vld [vmem:[#allocation7 + $0x20] ss:$16 sps:$4 sm:$0xff]  }
  0x7b   :  { %576 = vmatpush2.bf16.msra.mxu0 %v2688_v3 }
  0x7c   :  { %617 = vmatpush2.bf16.msra.mxu1 %v2689_v4  ;;  %1577 = vmatprep.subr.bf16.mxu0 %v2692_v10  ;;  %v2764_v10 = vld [vmem:[#allocation7 + $0x164] ss:$16 sps:$4 sm:$0xff]  }
  0x7d   :  { %1618 = vmatprep.subr.bf16.mxu1 %v2695_v14  ;;  %v2762_v14 = vld [vmem:[#allocation7 + $0x160] ss:$16 sps:$4 sm:$0xff]  }
  0x7e   :  { %578 = vmatmul.mubr.bf16.vlgmr.msra.gmra.mxu0 %v113_v6 }
  0x7f   :  { %619 = vmatmul.mubr.bf16.vlgmr.msra.gmra.mxu1 %v113_v6  ;;  %1578 = vmatpush1.bf16.msra.mxu0 %v2690_v8  ;;  %v2761_v8 = vld [vmem:[#allocation7 + $0x384] ss:$16 sps:$4 sm:$0xff]  }
  0x80   :  { %1619 = vmatpush1.bf16.msra.mxu1 %v2693_v11  ;;  %1579 = vmatprep.subr.bf16.mxu0 %v2698_v15  ;;  %v2767_v11 = vld [vmem:[#allocation7 + $0x364] ss:$16 sps:$4 sm:$0xff]   ;;  %v2765_v15 = vld [vmem:[#allocation7 + $0x360] ss:$16 sps:$4 sm:$0xff]  }
  0x81   :  { %1620 = vmatprep.subr.bf16.mxu1 %v2701_v16  ;;  %v2770_v16 = vld [vmem:[#allocation7 + $0x144] ss:$16 sps:$4 sm:$0xff]  }
  0x83   :  { %1580 = vmatpush1.bf16.msra.mxu0 %v2696_v17  ;;  %v2773_v17 = vld [vmem:[#allocation7 + $0x344] ss:$16 sps:$4 sm:$0xff]  }
  0x84   :  { %1581 = vmatprep.subr.bf16.mxu0 %v2704_v20  ;;  %v2771_v20 = vld [vmem:[#allocation7 + $0x340] ss:$16 sps:$4 sm:$0xff]  }
  0x87   :  { %1582 = vmatpush1.bf16.msra.mxu0 %v2702_v22  ;;  %v2779_v22 = vld [vmem:[#allocation7 + $0x324] ss:$16 sps:$4 sm:$0xff]  }
  0xca   :  { %v182_v19 = vpop.permute.xlu0 %181 }
  0xcb   :  { %v221_v33 = vmul.f32 %v208_v24, %v182_v19  ;;  %v223_v34 = vmul.f32 %v216_v25, %v182_v19  ;;  %v222_v42 = vmul.f32 %v212_v31, %v182_v19  ;;  %v224_v43 = vmul.f32 %v220_v32, %v182_v19  ;;  %v2699_v19 = vld [vmem:[#allocation7 + $0x2c0] ss:$16 sps:$4 sm:$0xff]   ;;  %v2710_v24 = vld [vmem:[#allocation7 + $0x84] ss:$16 sps:$4 sm:$0xff]  }
  0xcc   :  { %1621 = vmatpush1.bf16.msra.mxu1 %v2699_v19  ;;  %v2713_v25 = vld [vmem:[#allocation7 + $0x284] ss:$16 sps:$4 sm:$0xff]   ;;  %1583 = vmatprep.subr.bf16.mxu0 %v2710_v24  ;;  %v2717_v31 = vld [vmem:[#allocation7 + $0x260] ss:$16 sps:$4 sm:$0xff]  }
  0xcd   :  { %1622 = vmatprep.subr.bf16.mxu1 %v2707_v21  ;;  %1584 = vmatpush1.bf16.msra.mxu0 %v2708_v26  ;;  %v2722_v32 = vld [vmem:[#allocation7 + $0x44] ss:$16 sps:$4 sm:$0xff]   ;;  %v2768_v19 = vld [vmem:[#allocation7 + $0x140] ss:$16 sps:$4 sm:$0xff]  }
  0xce   :  { %v2776_v21 = vld [vmem:[#allocation7 + $0x124] ss:$16 sps:$4 sm:$0xff]   ;;  %v2777_v24 = vld [vmem:[#allocation7 + $0x320] ss:$16 sps:$4 sm:$0xff]  }
  0xcf   :  { %v2785_v26 = vld [vmem:[#allocation7 + $0x304] ss:$16 sps:$4 sm:$0xff]  }
  0xd0   :  { %v629_v30 = vpop.permute.xlu0 %628  ;;  %1623 = vmatpush1.bf16.msra.mxu1 %v2705_v23  ;;  %v2774_v23 = vld [vmem:[#allocation7 + $0x120] ss:$16 sps:$4 sm:$0xff]  }
  0xd1   :  { %v667_v37 = vmul.f32 %v654_v28, %v629_v30  ;;  %v669_v46 = vmul.f32 %v662_v35, %v629_v30  ;;  %v668_v47 = vmul.f32 %v658_v36, %v629_v30  ;;  %v670_v55 = vmul.f32 %v666_v39, %v629_v30  ;;  %v2716_v28 = vld [vmem:[#allocation7 + $0x64] ss:$16 sps:$4 sm:$0xff]   ;;  %1624 = vmatprep.subr.bf16.mxu1 %v2713_v25  ;;  %v2714_v30 = vld [vmem:[#allocation7 + $0x60] ss:$16 sps:$4 sm:$0xff]  }
  0xd2   :  { %1585 = vmatprep.subr.bf16.mxu0 %v2716_v28  ;;  %v2723_v35 = vld [vmem:[#allocation7 + $0x240] ss:$16 sps:$4 sm:$0xff]   ;;  %v2728_v36 = vld [vmem:[#allocation7 + $0x24] ss:$16 sps:$4 sm:$0xff]  }
  0xd3   :  { %1586 = vmatpush1.bf16.msra.mxu0 %v2714_v30  ;;  %v2729_v39 = vld [vmem:[#allocation7 + $0x220] ss:$16 sps:$4 sm:$0xff]   ;;  %v2782_v25 = vld [vmem:[#allocation7 + $0x104] ss:$16 sps:$4 sm:$0xff]   ;;  %v2791_v30 = vld [vmem:[#allocation7 + $0x2ec] ss:$16 sps:$4 sm:$0xff]  }
  0xd4   :  { %1625 = vmatpush1.bf16.msra.mxu1 %v2711_v27  ;;  %1587 = vmatprep.subr.bf16.mxu0 %v2722_v32  ;;  %v2780_v27 = vld [vmem:[#allocation7 + $0x100] ss:$16 sps:$4 sm:$0xff]  }
  0xd5   :  { %1626 = vmatprep.subr.bf16.mxu1 %v2719_v29  ;;  %v2783_v28 = vld [vmem:[#allocation7 + $0x300] ss:$16 sps:$4 sm:$0xff]   ;;  %v2788_v29 = vld [vmem:[#allocation7 + $0xec] ss:$16 sps:$4 sm:$0xff]  }
  0xd8   :  { %1627 = vmatpush1.bf16.msra.mxu1 %v2717_v31 }
 0x13e   :  { %v579_v40 = vpop.f32.mrf.mxu0 }
 0x13f   :  { %v620_v41 = vpop.f32.mrf.mxu1  ;;  %v580_v44 = vadd.f32 %v579_v40, %v221_v33  ;;  %v2725_v33 = vld [vmem:[#allocation7 + $0x244] ss:$16 sps:$4 sm:$0xff]  }
 0x140   :  { %v621_v45 = vadd.f32 %v620_v41, %v223_v34  ;;  %v581_v49 = vpop.f32.mrf.mxu0  ;;  %v2720_v34 = vld [vmem:[#allocation7 + $0x40] ss:$16 sps:$4 sm:$0xff]   ;;  %1628 = vmatprep.subr.bf16.mxu1 %v2725_v33  ;;  %v2734_v40 = vld [vmem:[#allocation7 + $0x4] ss:$16 sps:$4 sm:$0xff]  }
 0x141   :  { %v622_v51 = vpop.f32.mrf.mxu1  ;;  %v671_v52 = vadd.f32 %v667_v37, %v580_v44  ;;  %v582_v53 = vadd.f32 %v581_v49, %v222_v42  ;;  %v2731_v37 = vld [vmem:[#allocation7 + $0x224] ss:$16 sps:$4 sm:$0xff]   ;;  %1588 = vmatpush1.bf16.msra.mxu0 %v2720_v34  ;;  %1629 = vmatpush1.bf16.msra.mxu1 %v2723_v35  ;;  %v2732_v42 = vld [vmem:[#allocation7] ss:$16 sps:$4 sm:$0xff]  }
 0x142   :  { %v623_v54 = vadd.f32 %v622_v51, %v224_v43  ;;  %v583_v56 = vpop.f32.mrf.mxu0  ;;  %v673_v58 = vadd.f32 %v669_v46, %v621_v45  ;;  %1589 = vmatprep.subr.bf16.mxu0 %v2728_v36  ;;  %1630 = vmatprep.subr.bf16.mxu1 %v2731_v37  ;;  %v2737_v41 = vld [vmem:[#allocation7 + $0x204] ss:$16 sps:$4 sm:$0xff]   ;;  %v2735_v43 = vld [vmem:[#allocation7 + $0x200] ss:$16 sps:$4 sm:$0xff]  }
 0x143   :  { %v624_v57 = vpop.f32.mrf.mxu1  ;;  %v672_v59 = vadd.f32 %v668_v47, %v582_v53  ;;  %v3245_v63 = vadd.f32 %v680_v48, %v671_v52  ;;  %v2740_v44 = vld [vmem:[#allocation7 + $0x1e4] ss:$16 sps:$4 sm:$0xff]   ;;  %v2738_v46 = vld [vmem:[#allocation7 + $0x1e0] ss:$16 sps:$4 sm:$0xff]  }
 0x144   :  { %v584_v61 = vpop.f32.mrf.mxu0  ;;  %v674_v1 = vadd.f32 %v670_v55, %v623_v54  ;;  %v3250_v3 = vadd.f32 %v688_v60, %v673_v58  ;;  %v2743_v45 = vld [vmem:[#allocation7 + $0x3e4] ss:$16 sps:$4 sm:$0xff]   ;;  %v2741_v47 = vld [vmem:[#allocation7 + $0x3e0] ss:$16 sps:$4 sm:$0xff]  }
 0x145   :  { %v625_v62 = vpop.f32.mrf.mxu1  ;;  %v3247_v0 = vadd.f32 %v684_v50, %v672_v59  ;;  %1590 = vmatpush1.bf16.msra.mxu0 %v2726_v38  ;;  %1631 = vmatpush1.bf16.msra.mxu1 %v2729_v39  ;;  %v2746_v61 = vld [vmem:[#allocation7 + $0x1c4] ss:$16 sps:$4 sm:$0xff]   ;;  %v701_v34 = vld [vmem:[%s3371_s5] sm:$0xf] }
 0x146   :  { %v3254_v5 = vadd.f32 %v692_v2, %v674_v1  ;;  %1591 = vmatprep.subr.bf16.mxu0 %v2734_v40  ;;  %1632 = vmatprep.subr.bf16.mxu1 %v2737_v41  ;;  %v2749_v62 = vld [vmem:[#allocation7 + $0x3c4] ss:$16 sps:$4 sm:$0xff]   ;;  %v702_v35 = vld [vmem:[%s3372_s6] sm:$0xf]  ;;  %v737_v36 = vrot.slane %v701_v34, %v3221_v12  ;;  %v745_v37 = vrot.slane %v701_v34, %v3226_v18 }
 0x147   :  { %v703_v4 = vadd.f32 %v3247_v0, %v3245_v63  ;;  %v2752_v1 = vld [vmem:[#allocation7 + $0x1a4] ss:$16 sps:$4 sm:$0xff]   ;;  %v733_v38 = vrot.slane %v701_v34, %v3216_v9  ;;  %v741_v39 = vrot.slane %v701_v34, %v3223_v13  ;;  %v762_v41 = vrot.slane %v702_v35, %v3221_v12  ;;  %v2831_v34 = vld [vmem:[#allocation7 + $0x208] ss:$16 sps:$4 sm:$0xff]  }
 0x148   :  { %v2755_v2 = vld [vmem:[#allocation7 + $0x3a4] ss:$16 sps:$4 sm:$0xff]  }
 0x149   :  { %v704_v6 = vadd.f32 %v703_v4, %v3250_v3  ;;  %1592 = vmatpush1.bf16.msra.mxu0 %v2732_v42  ;;  %1633 = vmatpush1.bf16.msra.mxu1 %v2735_v43  ;;  %v2753_v4 = vld [vmem:[#allocation7 + $0x3a0] ss:$16 sps:$4 sm:$0xff]   ;;  %v770_v42 = vrot.slane %v702_v35, %v3226_v18  ;;  %v758_v43 = vrot.slane %v702_v35, %v3216_v9 }
 0x14a   :  { %1593 = vmatprep.subr.bf16.mxu0 %v2740_v44  ;;  %1634 = vmatprep.subr.bf16.mxu1 %v2743_v45  ;;  %v766_v44 = vrot.slane %v702_v35, %v3223_v13  ;;  %v2836_v35 = vld [vmem:[#allocation7 + $0x1ec] ss:$16 sps:$4 sm:$0xff]  }
 0x14b   :  { %v705_v7 = vadd.f32 %v704_v6, %v3254_v5  ;;  %v2756_v6 = vld [vmem:[#allocation7 + $0x180] ss:$16 sps:$4 sm:$0xff]  }
 0x14d   :  { %706 = vadd.xlane.f32.xlu1 %v705_v7  ;;  %1594 = vmatpush2.bf16.msra.mxu0 %v2738_v46  ;;  %v2759_v7 = vld [vmem:[#allocation7 + $0x380] ss:$16 sps:$4 sm:$0xff]  }
 0x14e   :  { %1635 = vmatpush2.bf16.msra.mxu1 %v2741_v47  ;;  %1595 = vmatprep.subr.bf16.mxu0 %v2746_v61 }
 0x14f   :  { %1636 = vmatprep.subr.bf16.mxu1 %v2749_v62 }
 0x1d6   :  { %v707_v48 = vpop.xlane.xlu1 %706 }
 0x1d7   :  { %v708_v49 = vmul.f32 0.001953125, %v707_v48 }
 0x1d9   :  { %v3259_v50 = vsub.f32 %v3245_v63, %v708_v49  ;;  %v3262_v51 = vsub.f32 %v3247_v0, %v708_v49  ;;  %v3265_v52 = vsub.f32 %v3250_v3, %v708_v49  ;;  %v3268_v53 = vsub.f32 %v3254_v5, %v708_v49  ;;  %v2744_v63 = vld [vmem:[#allocation7 + $0x1c0] ss:$16 sps:$4 sm:$0xff]   ;;  %v2758_v5 = vld [vmem:[#allocation7 + $0x184] ss:$16 sps:$4 sm:$0xff]  }
 0x1da   :  { %v2747_v0 = vld [vmem:[#allocation7 + $0x3c0] ss:$16 sps:$4 sm:$0xff]   ;;  %1596 = vmatpush2.bf16.msra.mxu0 %v2744_v63 }
 0x1db   :  { %v713_v54 = vmul.f32 %v3259_v50, %v3259_v50  ;;  %v714_v55 = vmul.f32 %v3262_v51, %v3262_v51  ;;  %v715_v56 = vmul.f32 %v3265_v52, %v3265_v52  ;;  %v716_v58 = vmul.f32 %v3268_v53, %v3268_v53  ;;  %1637 = vmatpush2.bf16.msra.mxu1 %v2747_v0  ;;  %v2750_v3 = vld [vmem:[#allocation7 + $0x1a0] ss:$16 sps:$4 sm:$0xff]  }
 0x1dc   :  { %1597 = vmatprep.subr.bf16.mxu0 %v2752_v1  ;;  %1638 = vmatprep.subr.bf16.mxu1 %v2755_v2  ;;  %v2786_v2 = vld [vmem:[#allocation7 + $0xe8] ss:$16 sps:$4 sm:$0xff]  }
 0x1dd   :  { %v717_v57 = vadd.f32 %v714_v55, %v713_v54 }
 0x1de   :  { %1598 = vmatpush2.bf16.msra.mxu0 %v2750_v3 }
 0x1df   :  { %v718_v59 = vadd.f32 %v717_v57, %v715_v56  ;;  %1639 = vmatpush2.bf16.msra.mxu1 %v2753_v4  ;;  %1599 = vmatprep.subr.bf16.mxu0 %v2758_v5  ;;  %v2797_v4 = vld [vmem:[#allocation7 + $0x2cc] ss:$16 sps:$4 sm:$0xff]   ;;  %v2792_v5 = vld [vmem:[#allocation7 + $0xc8] ss:$16 sps:$4 sm:$0xff]  }
 0x1e0   :  { %1640 = vmatprep.subr.bf16.mxu1 %v2761_v8  ;;  %v2803_v8 = vld [vmem:[#allocation7 + $0x2ac] ss:$16 sps:$4 sm:$0xff]  }
 0x1e1   :  { %v719_v60 = vadd.f32 %v718_v59, %v716_v58 }
 0x1e2   :  { %1600 = vmatpush2.bf16.msra.mxu0 %v2756_v6  ;;  %v2795_v6 = vld [vmem:[#allocation7 + $0x2c8] ss:$16 sps:$4 sm:$0xff]  }
 0x1e3   :  { %720 = vadd.xlane.f32.xlu1 %v719_v60  ;;  %1641 = vmatpush2.bf16.msra.mxu1 %v2759_v7  ;;  %v2800_v7 = vld [vmem:[#allocation7 + $0xac] ss:$16 sps:$4 sm:$0xff]  }
 0x1e4   :  { %1601 = vmatprep.subr.bf16.mxu0 %v2764_v10  ;;  %1642 = vmatprep.subr.bf16.mxu1 %v2767_v11  ;;  %v2798_v10 = vld [vmem:[#allocation7 + $0xa8] ss:$16 sps:$4 sm:$0xff]  }
 0x1e5   :  { %v2801_v11 = vld [vmem:[#allocation7 + $0x2a8] ss:$16 sps:$4 sm:$0xff]  }
 0x1e6   :  { %1602 = vmatpush2.bf16.msra.mxu0 %v2762_v14  ;;  %v2806_v14 = vld [vmem:[#allocation7 + $0x8c] ss:$16 sps:$4 sm:$0xff]  }
 0x1e7   :  { %1643 = vmatpush2.bf16.msra.mxu1 %v2765_v15  ;;  %1603 = vmatprep.subr.bf16.mxu0 %v2770_v16  ;;  %v2809_v15 = vld [vmem:[#allocation7 + $0x28c] ss:$16 sps:$4 sm:$0xff]   ;;  %v2804_v16 = vld [vmem:[#allocation7 + $0x88] ss:$16 sps:$4 sm:$0xff]  }
 0x1e8   :  { %1644 = vmatprep.subr.bf16.mxu1 %v2773_v17  ;;  %v2807_v17 = vld [vmem:[#allocation7 + $0x288] ss:$16 sps:$4 sm:$0xff]  }
 0x1ea   :  { %1604 = vmatpush2.bf16.msra.mxu0 %v2768_v19  ;;  %v2812_v19 = vld [vmem:[#allocation7 + $0x6c] ss:$16 sps:$4 sm:$0xff]  }
 0x1eb   :  { %1645 = vmatpush2.bf16.msra.mxu1 %v2771_v20  ;;  %1605 = vmatprep.subr.bf16.mxu0 %v2776_v21  ;;  %v2815_v20 = vld [vmem:[#allocation7 + $0x26c] ss:$16 sps:$4 sm:$0xff]   ;;  %v2810_v21 = vld [vmem:[#allocation7 + $0x68] ss:$16 sps:$4 sm:$0xff]  }
 0x1ec   :  { %1646 = vmatprep.subr.bf16.mxu1 %v2779_v22  ;;  %v2813_v22 = vld [vmem:[#allocation7 + $0x268] ss:$16 sps:$4 sm:$0xff]  }
 0x1ee   :  { %1606 = vmatpush2.bf16.msra.mxu0 %v2774_v23  ;;  %v2818_v23 = vld [vmem:[#allocation7 + $0x4c] ss:$16 sps:$4 sm:$0xff]  }
 0x1ef   :  { %1647 = vmatpush2.bf16.msra.mxu1 %v2777_v24  ;;  %1607 = vmatprep.subr.bf16.mxu0 %v2782_v25  ;;  %v2821_v24 = vld [vmem:[#allocation7 + $0x24c] ss:$16 sps:$4 sm:$0xff]   ;;  %v2816_v25 = vld [vmem:[#allocation7 + $0x48] ss:$16 sps:$4 sm:$0xff]  }
 0x1f0   :  { %1648 = vmatprep.subr.bf16.mxu1 %v2785_v26  ;;  %v2819_v26 = vld [vmem:[#allocation7 + $0x248] ss:$16 sps:$4 sm:$0xff]  }
 0x1f2   :  { %1608 = vmatpush2.bf16.msra.mxu0 %v2780_v27  ;;  %v2824_v27 = vld [vmem:[#allocation7 + $0x2c] ss:$16 sps:$4 sm:$0xff]  }
 0x1f3   :  { %1649 = vmatpush2.bf16.msra.mxu1 %v2783_v28  ;;  %1659 = vmatprep.subr.bf16.mxu0 %v2788_v29  ;;  %v2827_v28 = vld [vmem:[#allocation7 + $0x22c] ss:$16 sps:$4 sm:$0xff]   ;;  %v2822_v29 = vld [vmem:[#allocation7 + $0x28] ss:$16 sps:$4 sm:$0xff]  }
 0x1f4   :  { %1700 = vmatprep.subr.bf16.mxu1 %v2791_v30  ;;  %v2825_v30 = vld [vmem:[#allocation7 + $0x228] ss:$16 sps:$4 sm:$0xff]  }
 0x26c   :  { %v721_v31 = vpop.xlane.xlu1 %720 }
 0x26d   :  { %v722_v32 = vmul.f32 0.001953125, %v721_v31  ;;  %v2830_v31 = vld [vmem:[#allocation7 + $0xc] ss:$16 sps:$4 sm:$0xff]  }
 0x26f   :  { %v723_v33 = vadd.f32 1e-05, %v722_v32  ;;  %v2833_v32 = vld [vmem:[#allocation7 + $0x20c] ss:$16 sps:$4 sm:$0xff]  }
 0x271   :  { %2978 = vrsqrt.f32 %v723_v33  ;;  %v2828_v33 = vld [vmem:[#allocation7 + $0x8] ss:$16 sps:$4 sm:$0xff]  }
 0x27e   :  { %v2979_v40 = vpop.eup %2978 }
 0x27f   :  { %v726_v45 = vmul.f32 %v2979_v40, %v3262_v51  ;;  %v728_v46 = vmul.f32 %v2979_v40, %v3268_v53  ;;  %v725_v47 = vmul.f32 %v2979_v40, %v3259_v50  ;;  %v727_v48 = vmul.f32 %v2979_v40, %v3265_v52  ;;  %v2789_v53 = vld [vmem:[#allocation7 + $0x2e8] ss:$16 sps:$4 sm:$0xff]   ;;  %v2794_v52 = vld [vmem:[#allocation7 + $0xcc] ss:$16 sps:$4 sm:$0xff]  }
 0x280   :  { %v2845_v40 = vld [vmem:[#allocation7 + $0x3cc] ss:$16 sps:$4 sm:$0xff]  }
 0x281   :  { %v751_v49 = vmul.f32 %v737_v36, %v726_v45  ;;  %v753_v54 = vmul.f32 %v745_v37, %v728_v46  ;;  %v750_v55 = vmul.f32 %v733_v38, %v725_v47  ;;  %v752_v56 = vmul.f32 %v741_v39, %v727_v48  ;;  %v2839_v36 = vld [vmem:[#allocation7 + $0x3ec] ss:$16 sps:$4 sm:$0xff]   ;;  %v2834_v37 = vld [vmem:[#allocation7 + $0x1e8] ss:$16 sps:$4 sm:$0xff]  }
 0x282   :  { %v2837_v38 = vld [vmem:[#allocation7 + $0x3e8] ss:$16 sps:$4 sm:$0xff]   ;;  %v2842_v39 = vld [vmem:[#allocation7 + $0x1cc] ss:$16 sps:$4 sm:$0xff]  }
 0x283   :  { %v776_v57 = vadd.f32 %v762_v41, %v751_v49  ;;  %v778_v58 = vadd.f32 %v770_v42, %v753_v54  ;;  %v775_v59 = vadd.f32 %v758_v43, %v750_v55  ;;  %v777_v60 = vadd.f32 %v766_v44, %v752_v56  ;;  %v2840_v41 = vld [vmem:[#allocation7 + $0x1c8] ss:$16 sps:$4 sm:$0xff]   ;;  %v2848_v43 = vld [vmem:[#allocation7 + $0x1ac] ss:$16 sps:$4 sm:$0xff]  }
 0x284   :  { %v2843_v42 = vld [vmem:[#allocation7 + $0x3c8] ss:$16 sps:$4 sm:$0xff]   ;;  %v2851_v44 = vld [vmem:[#allocation7 + $0x3ac] ss:$16 sps:$4 sm:$0xff]  }
 0x285   :  { %v780_v61 = vmax.f32 %v776_v57, 0.0  ;;  %v782_v62 = vmax.f32 %v778_v58, 0.0  ;;  %v779_v63 = vmax.f32 %v775_v59, 0.0  ;;  %v781_v0 = vmax.f32 %v777_v60, 0.0  ;;  %v2846_v45 = vld [vmem:[#allocation7 + $0x1a8] ss:$16 sps:$4 sm:$0xff]  }
 0x286   :  { %v2849_v46 = vld [vmem:[#allocation7 + $0x3a8] ss:$16 sps:$4 sm:$0xff]   ;;  %v2854_v47 = vld [vmem:[#allocation7 + $0x18c] ss:$16 sps:$4 sm:$0xff]  }
 0x287   :  { %v784_v1 = vpack.c.bf16 %v780_v61, %v780_v61  ;;  %v786_v51 = vpack.c.bf16 %v782_v62, %v782_v62  ;;  %v3296_v3 = vpack.c.bf16 %v779_v63, %v779_v63  ;;  %v3298_v50 = vpack.c.bf16 %v781_v0, %v781_v0  ;;  %v2857_v48 = vld [vmem:[#allocation7 + $0x38c] ss:$16 sps:$4 sm:$0xff]   ;;  %v2852_v49 = vld [vmem:[#allocation7 + $0x188] ss:$16 sps:$4 sm:$0xff]  }
 0x288   :  { %v2855_v54 = vld [vmem:[#allocation7 + $0x388] ss:$16 sps:$4 sm:$0xff]   ;;  %v2860_v55 = vld [vmem:[#allocation7 + $0x16c] ss:$16 sps:$4 sm:$0xff]  }
 0x289   :  { %1609 = vmatprep.mubr.bf16.mxu0 %v784_v1  ;;  %1650 = vmatprep.mubr.bf16.mxu1 %v786_v51  ;;  %v2863_v56 = vld [vmem:[#allocation7 + $0x36c] ss:$16 sps:$4 sm:$0xff]   ;;  %v2858_v57 = vld [vmem:[#allocation7 + $0x168] ss:$16 sps:$4 sm:$0xff]  }
 0x28a   :  { %1610 = vmatmul.mubr.bf16.vlgmr.msra.gmra.mxu0 %v3296_v3  ;;  %1651 = vmatmul.mubr.bf16.vlgmr.msra.gmra.mxu1 %v3298_v50  ;;  %v2861_v58 = vld [vmem:[#allocation7 + $0x368] ss:$16 sps:$4 sm:$0xff]   ;;  %v2866_v59 = vld [vmem:[#allocation7 + $0x14c] ss:$16 sps:$4 sm:$0xff]  }
 0x28b   :  { %1660 = vmatpush1.bf16.msra.mxu0 %v2786_v2  ;;  %1701 = vmatpush1.bf16.msra.mxu1 %v2789_v53  ;;  %v2869_v60 = vld [vmem:[#allocation7 + $0x34c] ss:$16 sps:$4 sm:$0xff]   ;;  %v2864_v61 = vld [vmem:[#allocation7 + $0x148] ss:$16 sps:$4 sm:$0xff]  }
 0x28c   :  { %1691 = vmatprep.mubr.bf16.mxu0 %v784_v1  ;;  %1732 = vmatprep.mubr.bf16.mxu1 %v786_v51  ;;  %v2867_v62 = vld [vmem:[#allocation7 + $0x348] ss:$16 sps:$4 sm:$0xff]   ;;  %v2872_v63 = vld [vmem:[#allocation7 + $0x12c] ss:$16 sps:$4 sm:$0xff]  }
 0x28d   :  { %1661 = vmatprep.subr.bf16.mxu0 %v2794_v52  ;;  %1702 = vmatprep.subr.bf16.mxu1 %v2797_v4  ;;  %v2875_v0 = vld [vmem:[#allocation7 + $0x32c] ss:$16 sps:$4 sm:$0xff]   ;;  %v2870_v1 = vld [vmem:[#allocation7 + $0x128] ss:$16 sps:$4 sm:$0xff]  }
 0x28e   :  { %v2873_v51 = vld [vmem:[#allocation7 + $0x328] ss:$16 sps:$4 sm:$0xff]   ;;  %v2878_v2 = vld [vmem:[#allocation7 + $0x10c] ss:$16 sps:$4 sm:$0xff]  }
 0x28f   :  { %1662 = vmatpush1.bf16.msra.mxu0 %v2792_v5  ;;  %1703 = vmatpush1.bf16.msra.mxu1 %v2795_v6  ;;  %v2881_v53 = vld [vmem:[#allocation7 + $0x30c] ss:$16 sps:$4 sm:$0xff]   ;;  %v2876_v52 = vld [vmem:[#allocation7 + $0x108] ss:$16 sps:$4 sm:$0xff]  }
 0x290   :  { %1663 = vmatprep.subr.bf16.mxu0 %v2800_v7  ;;  %1704 = vmatprep.subr.bf16.mxu1 %v2803_v8  ;;  %v2879_v4 = vld [vmem:[#allocation7 + $0x308] ss:$16 sps:$4 sm:$0xff]  }
 0x293   :  { %1664 = vmatpush1.bf16.msra.mxu0 %v2798_v10  ;;  %1705 = vmatpush1.bf16.msra.mxu1 %v2801_v11 }
 0x294   :  { %1665 = vmatprep.subr.bf16.mxu0 %v2806_v14  ;;  %1706 = vmatprep.subr.bf16.mxu1 %v2809_v15 }
 0x297   :  { %1666 = vmatpush1.bf16.msra.mxu0 %v2804_v16  ;;  %1707 = vmatpush1.bf16.msra.mxu1 %v2807_v17  ;;  %v915_v16 = vld [vmem:[%s3374_s8] sm:$0xf] }
 0x298   :  { %1667 = vmatprep.subr.bf16.mxu0 %v2812_v19  ;;  %1708 = vmatprep.subr.bf16.mxu1 %v2815_v20  ;;  %v924_v17 = vrot.slane %v915_v16, %v3221_v12  ;;  %v920_v19 = vrot.slane %v915_v16, %v3216_v9 }
 0x29b   :  { %1668 = vmatpush1.bf16.msra.mxu0 %v2810_v21  ;;  %1709 = vmatpush1.bf16.msra.mxu1 %v2813_v22  ;;  %v932_v22 = vrot.slane %v915_v16, %v3226_v18 }
 0x29c   :  { %1669 = vmatprep.subr.bf16.mxu0 %v2818_v23  ;;  %1710 = vmatprep.subr.bf16.mxu1 %v2821_v24 }
 0x29f   :  { %1670 = vmatpush1.bf16.msra.mxu0 %v2816_v25  ;;  %1711 = vmatpush1.bf16.msra.mxu1 %v2819_v26 }
 0x2a0   :  { %1671 = vmatprep.subr.bf16.mxu0 %v2824_v27  ;;  %1712 = vmatprep.subr.bf16.mxu1 %v2827_v28 }
 0x2a3   :  { %1672 = vmatpush1.bf16.msra.mxu0 %v2822_v29  ;;  %1713 = vmatpush1.bf16.msra.mxu1 %v2825_v30 }
 0x2a4   :  { %1673 = vmatprep.subr.bf16.mxu0 %v2830_v31  ;;  %1714 = vmatprep.subr.bf16.mxu1 %v2833_v32 }
 0x2a7   :  { %1674 = vmatpush1.bf16.msra.mxu0 %v2828_v33  ;;  %1715 = vmatpush1.bf16.msra.mxu1 %v2831_v34 }
 0x2a8   :  { %1675 = vmatprep.subr.bf16.mxu0 %v2836_v35  ;;  %1716 = vmatprep.subr.bf16.mxu1 %v2839_v36 }
 0x2ab   :  { %1676 = vmatpush2.bf16.msra.mxu0 %v2834_v37  ;;  %1717 = vmatpush2.bf16.msra.mxu1 %v2837_v38 }
 0x2ac   :  { %1677 = vmatprep.subr.bf16.mxu0 %v2842_v39  ;;  %1718 = vmatprep.subr.bf16.mxu1 %v2845_v40  ;;  %v2882_v39 = vld [vmem:[#allocation10 + $0x70] ss:$8 sps:$4 sm:$0xff]   ;;  %v2884_v40 = vld [vmem:[#allocation10 + $0x74] ss:$8 sps:$4 sm:$0xff]  }
 0x2af   :  { %1678 = vmatpush2.bf16.msra.mxu0 %v2840_v41  ;;  %1719 = vmatpush2.bf16.msra.mxu1 %v2843_v42  ;;  %v2885_v41 = vld [vmem:[#allocation10 + $0x170] ss:$8 sps:$4 sm:$0xff]   ;;  %v2887_v42 = vld [vmem:[#allocation10 + $0x174] ss:$8 sps:$4 sm:$0xff]  }
 0x2b0   :  { %1679 = vmatprep.subr.bf16.mxu0 %v2848_v43  ;;  %1720 = vmatprep.subr.bf16.mxu1 %v2851_v44  ;;  %v2890_v43 = vld [vmem:[#allocation10 + $0x64] ss:$8 sps:$4 sm:$0xff]  }
 0x2b1   :  { %v2893_v44 = vld [vmem:[#allocation10 + $0x164] ss:$8 sps:$4 sm:$0xff]  }
 0x2b3   :  { %1680 = vmatpush2.bf16.msra.mxu0 %v2846_v45  ;;  %1721 = vmatpush2.bf16.msra.mxu1 %v2849_v46  ;;  %v2888_v45 = vld [vmem:[#allocation10 + $0x60] ss:$8 sps:$4 sm:$0xff]  }
 0x2b4   :  { %1681 = vmatprep.subr.bf16.mxu0 %v2854_v47  ;;  %1722 = vmatprep.subr.bf16.mxu1 %v2857_v48  ;;  %v2891_v46 = vld [vmem:[#allocation10 + $0x160] ss:$8 sps:$4 sm:$0xff]   ;;  %v2896_v47 = vld [vmem:[#allocation10 + $0x54] ss:$8 sps:$4 sm:$0xff]  }
 0x2b5   :  { %v2899_v48 = vld [vmem:[#allocation10 + $0x154] ss:$8 sps:$4 sm:$0xff]  }
 0x2b7   :  { %1682 = vmatpush2.bf16.msra.mxu0 %v2852_v49  ;;  %1723 = vmatpush2.bf16.msra.mxu1 %v2855_v54  ;;  %v2894_v49 = vld [vmem:[#allocation10 + $0x50] ss:$8 sps:$4 sm:$0xff]  }
 0x2b8   :  { %1683 = vmatprep.subr.bf16.mxu0 %v2860_v55  ;;  %1724 = vmatprep.subr.bf16.mxu1 %v2863_v56  ;;  %v2897_v54 = vld [vmem:[#allocation10 + $0x150] ss:$8 sps:$4 sm:$0xff]   ;;  %v2902_v55 = vld [vmem:[#allocation10 + $0x44] ss:$8 sps:$4 sm:$0xff]  }
 0x2b9   :  { %v2905_v56 = vld [vmem:[#allocation10 + $0x144] ss:$8 sps:$4 sm:$0xff]  }
 0x2bb   :  { %1684 = vmatpush2.bf16.msra.mxu0 %v2858_v57  ;;  %1725 = vmatpush2.bf16.msra.mxu1 %v2861_v58  ;;  %v2900_v57 = vld [vmem:[#allocation10 + $0x40] ss:$8 sps:$4 sm:$0xff]  }
 0x2bc   :  { %1685 = vmatprep.subr.bf16.mxu0 %v2866_v59  ;;  %1726 = vmatprep.subr.bf16.mxu1 %v2869_v60  ;;  %v2903_v58 = vld [vmem:[#allocation10 + $0x140] ss:$8 sps:$4 sm:$0xff]   ;;  %v2908_v59 = vld [vmem:[#allocation10 + $0x34] ss:$8 sps:$4 sm:$0xff]  }
 0x2bd   :  { %v2911_v60 = vld [vmem:[#allocation10 + $0x134] ss:$8 sps:$4 sm:$0xff]  }
 0x2bf   :  { %1686 = vmatpush2.bf16.msra.mxu0 %v2864_v61  ;;  %1727 = vmatpush2.bf16.msra.mxu1 %v2867_v62  ;;  %v2906_v61 = vld [vmem:[#allocation10 + $0x30] ss:$8 sps:$4 sm:$0xff]  }
 0x2c0   :  { %1687 = vmatprep.subr.bf16.mxu0 %v2872_v63  ;;  %1728 = vmatprep.subr.bf16.mxu1 %v2875_v0  ;;  %v2909_v62 = vld [vmem:[#allocation10 + $0x130] ss:$8 sps:$4 sm:$0xff]   ;;  %v2914_v63 = vld [vmem:[#allocation10 + $0x24] ss:$8 sps:$4 sm:$0xff]  }
 0x2c1   :  { %v2917_v0 = vld [vmem:[#allocation10 + $0x124] ss:$8 sps:$4 sm:$0xff]  }
 0x2c3   :  { %1688 = vmatpush2.bf16.msra.mxu0 %v2870_v1  ;;  %1729 = vmatpush2.bf16.msra.mxu1 %v2873_v51  ;;  %v2912_v1 = vld [vmem:[#allocation10 + $0x20] ss:$8 sps:$4 sm:$0xff]  }
 0x2c4   :  { %1689 = vmatprep.subr.bf16.mxu0 %v2878_v2  ;;  %1730 = vmatprep.subr.bf16.mxu1 %v2881_v53  ;;  %v2915_v51 = vld [vmem:[#allocation10 + $0x120] ss:$8 sps:$4 sm:$0xff]   ;;  %v2920_v2 = vld [vmem:[#allocation10 + $0x14] ss:$8 sps:$4 sm:$0xff]  }
 0x2c5   :  { %v2923_v53 = vld [vmem:[#allocation10 + $0x114] ss:$8 sps:$4 sm:$0xff]  }
 0x2c7   :  { %1690 = vmatpush2.bf16.msra.mxu0 %v2876_v52  ;;  %1731 = vmatpush2.bf16.msra.mxu1 %v2879_v4  ;;  %v2918_v52 = vld [vmem:[#allocation10 + $0x10] ss:$8 sps:$4 sm:$0xff]  }
 0x2c8   :  { %2223 = vmatprep.subr.bf16.mxu0 %v2884_v40  ;;  %2264 = vmatprep.subr.bf16.mxu1 %v2887_v42  ;;  %v2921_v4 = vld [vmem:[#allocation10 + $0x110] ss:$8 sps:$4 sm:$0xff]   ;;  %v2956_v40 = vld [vmem:[#allocation10 + $0xb4] ss:$8 sps:$4 sm:$0xff]  }
 0x2c9   :  { %v2954_v42 = vld [vmem:[#allocation10 + $0xb0] ss:$8 sps:$4 sm:$0xff]  }
 0x2ca   :  { %1692 = vmatmul.mubr.bf16.vlgmr.msra.gmra.mxu0 %v3296_v3  ;;  %1733 = vmatmul.mubr.bf16.vlgmr.msra.gmra.mxu1 %v3298_v50  ;;  %v928_v50 = vrot.slane %v915_v16, %v3223_v13 }
 0x2cb   :  { %2224 = vmatpush1.bf16.msra.mxu0 %v2882_v39  ;;  %2265 = vmatpush1.bf16.msra.mxu1 %v2885_v41  ;;  %v2951_v39 = vld [vmem:[#allocation10 + $0x1c0] ss:$8 sps:$4 sm:$0xff]   ;;  %v2959_v41 = vld [vmem:[#allocation10 + $0x1b4] ss:$8 sps:$4 sm:$0xff]  }
 0x2cc   :  { %2225 = vmatprep.subr.bf16.mxu0 %v2890_v43  ;;  %2266 = vmatprep.subr.bf16.mxu1 %v2893_v44  ;;  %v2957_v43 = vld [vmem:[#allocation10 + $0x1b0] ss:$8 sps:$4 sm:$0xff]   ;;  %v2962_v44 = vld [vmem:[#allocation10 + $0xa4] ss:$8 sps:$4 sm:$0xff]  }
 0x2cf   :  { %2226 = vmatpush1.bf16.msra.mxu0 %v2888_v45  ;;  %2267 = vmatpush1.bf16.msra.mxu1 %v2891_v46  ;;  %v2965_v45 = vld [vmem:[#allocation10 + $0x1a4] ss:$8 sps:$4 sm:$0xff]   ;;  %v2960_v46 = vld [vmem:[#allocation10 + $0xa0] ss:$8 sps:$4 sm:$0xff]  }
 0x2d0   :  { %2227 = vmatprep.subr.bf16.mxu0 %v2896_v47  ;;  %2268 = vmatprep.subr.bf16.mxu1 %v2899_v48  ;;  %v2963_v47 = vld [vmem:[#allocation10 + $0x1a0] ss:$8 sps:$4 sm:$0xff]   ;;  %v2968_v48 = vld [vmem:[#allocation10 + $0x94] ss:$8 sps:$4 sm:$0xff]  }
 0x2d3   :  { %2228 = vmatpush1.bf16.msra.mxu0 %v2894_v49  ;;  %2269 = vmatpush1.bf16.msra.mxu1 %v2897_v54  ;;  %v2971_v49 = vld [vmem:[#allocation10 + $0x194] ss:$8 sps:$4 sm:$0xff]   ;;  %v2966_v54 = vld [vmem:[#allocation10 + $0x90] ss:$8 sps:$4 sm:$0xff]  }
 0x2d4   :  { %2229 = vmatprep.subr.bf16.mxu0 %v2902_v55  ;;  %2270 = vmatprep.subr.bf16.mxu1 %v2905_v56  ;;  %v2969_v55 = vld [vmem:[#allocation10 + $0x190] ss:$8 sps:$4 sm:$0xff]   ;;  %v2974_v56 = vld [vmem:[#allocation10 + $0x84] ss:$8 sps:$4 sm:$0xff]  }
 0x2d7   :  { %2230 = vmatpush1.bf16.msra.mxu0 %v2900_v57  ;;  %2271 = vmatpush1.bf16.msra.mxu1 %v2903_v58  ;;  %v2977_v57 = vld [vmem:[#allocation10 + $0x184] ss:$8 sps:$4 sm:$0xff]   ;;  %v2972_v58 = vld [vmem:[#allocation10 + $0x80] ss:$8 sps:$4 sm:$0xff]  }
 0x2d8   :  { %2231 = vmatprep.subr.bf16.mxu0 %v2908_v59  ;;  %2272 = vmatprep.subr.bf16.mxu1 %v2911_v60  ;;  %v2975_v59 = vld [vmem:[#allocation10 + $0x180] ss:$8 sps:$4 sm:$0xff]  }
 0x2db   :  { %2232 = vmatpush1.bf16.msra.mxu0 %v2906_v61  ;;  %2273 = vmatpush1.bf16.msra.mxu1 %v2909_v62 }
 0x2dc   :  { %2233 = vmatprep.subr.bf16.mxu0 %v2914_v63  ;;  %2274 = vmatprep.subr.bf16.mxu1 %v2917_v0  ;;  %v1741_v63 = vld [vmem:[#allocation8] sm:$0xf]  ;;  %v1742_v0 = vld [vmem:[%s3376_s10] sm:$0xf] }
 0x2df   :  { %2234 = vmatpush1.bf16.msra.mxu0 %v2912_v1  ;;  %2275 = vmatpush1.bf16.msra.mxu1 %v2915_v51  ;;  %v1777_v1 = vrot.slane %v1741_v63, %v3221_v12  ;;  %v1785_v51 = vrot.slane %v1741_v63, %v3226_v18 }
 0x2e0   :  { %2235 = vmatprep.subr.bf16.mxu0 %v2920_v2  ;;  %2276 = vmatprep.subr.bf16.mxu1 %v2923_v53  ;;  %v1773_v2 = vrot.slane %v1741_v63, %v3216_v9  ;;  %v1781_v53 = vrot.slane %v1741_v63, %v3223_v13 }
 0x2e3   :  { %2236 = vmatpush1.bf16.msra.mxu0 %v2918_v52  ;;  %2277 = vmatpush1.bf16.msra.mxu1 %v2921_v4  ;;  %v1802_v4 = vrot.slane %v1742_v0, %v3221_v12 }
 0x34a   :  { %v1611_v5 = vpop.f32.mrf.mxu0  ;;  %v1652_v6 = vpop.f32.mrf.mxu1 }
 0x34b   :  { %v1612_v3 = vadd.f32 %v1611_v5, %v920_v19  ;;  %v2926_v5 = vld [vmem:[#allocation10 + $0x4] ss:$8 sps:$4 sm:$0xff]  }
 0x34c   :  { %v1613_v7 = vpop.f32.mrf.mxu0  ;;  %v1654_v8 = vpop.f32.mrf.mxu1  ;;  %2237 = vmatprep.subr.bf16.mxu0 %v2926_v5  ;;  %v1810_v5 = vrot.slane %v1742_v0, %v3226_v18 }
 0x34d   :  { %v1614_v20 = vadd.f32 %v1613_v7, %v924_v17  ;;  %v3313_v25 = vadd.f32 %v1652_v6, %v1612_v3  ;;  %v2929_v6 = vld [vmem:[#allocation10 + $0x104] ss:$8 sps:$4 sm:$0xff]   ;;  %v2924_v7 = vld [vmem:[#allocation10] ss:$8 sps:$4 sm:$0xff]  }
 0x34e   :  { %v1615_v10 = vpop.f32.mrf.mxu0  ;;  %v1656_v11 = vpop.f32.mrf.mxu1  ;;  %2278 = vmatprep.subr.bf16.mxu1 %v2929_v6  ;;  %2238 = vmatpush1.bf16.msra.mxu0 %v2924_v7  ;;  %v1798_v6 = vrot.slane %v1742_v0, %v3216_v9  ;;  %v1806_v7 = vrot.slane %v1742_v0, %v3223_v13 }
 0x34f   :  { %v3310_v21 = vadd.f32 %v1654_v8, %v1614_v20  ;;  %v2927_v8 = vld [vmem:[#allocation10 + $0x100] ss:$8 sps:$4 sm:$0xff]   ;;  %v2932_v10 = vld [vmem:[#allocation10 + $0xf4] ss:$8 sps:$4 sm:$0xff]  }
 0x350   :  { %v1616_v14 = vpop.f32.mrf.mxu0  ;;  %v1657_v15 = vpop.f32.mrf.mxu1  ;;  %v2935_v11 = vld [vmem:[#allocation10 + $0x1f4] ss:$8 sps:$4 sm:$0xff]   ;;  %2279 = vmatpush1.bf16.msra.mxu1 %v2927_v8  ;;  %2239 = vmatprep.subr.bf16.mxu0 %v2932_v10 }
 0x351   :  { %v1743_v29 = vadd.f32 %v3310_v21, %v3313_v25  ;;  %v2930_v14 = vld [vmem:[#allocation10 + $0xf0] ss:$8 sps:$4 sm:$0xff]   ;;  %2280 = vmatprep.subr.bf16.mxu1 %v2935_v11 }
 0x352   :  { %v2933_v15 = vld [vmem:[#allocation10 + $0x1f0] ss:$8 sps:$4 sm:$0xff]   ;;  %2240 = vmatpush2.bf16.msra.mxu0 %v2930_v14 }
 0x354   :  { %2281 = vmatpush2.bf16.msra.mxu1 %v2933_v15 }
 0x38a   :  { %v1693_v23 = vpop.f32.mrf.mxu0  ;;  %v1734_v24 = vpop.f32.mrf.mxu1 }
 0x38b   :  { %v1694_v26 = vadd.f32 %v1693_v23, %v928_v50 }
 0x38c   :  { %v1695_v27 = vpop.f32.mrf.mxu0  ;;  %v1736_v28 = vpop.f32.mrf.mxu1 }
 0x38d   :  { %v3317_v30 = vadd.f32 %v1734_v24, %v1694_v26  ;;  %v1696_v31 = vadd.f32 %v1695_v27, %v932_v22 }
 0x38e   :  { %v1697_v32 = vpop.f32.mrf.mxu0  ;;  %v1738_v33 = vpop.f32.mrf.mxu1 }
 0x38f   :  { %v1744_v34 = vadd.f32 %v1743_v29, %v3317_v30  ;;  %v3320_v35 = vadd.f32 %v1736_v28, %v1696_v31  ;;  %v2938_v28 = vld [vmem:[#allocation10 + $0xe4] ss:$8 sps:$4 sm:$0xff]   ;;  %v2939_v31 = vld [vmem:[#allocation10 + $0x1e0] ss:$8 sps:$4 sm:$0xff]   ;;  %v2944_v32 = vld [vmem:[#allocation10 + $0xd4] ss:$8 sps:$4 sm:$0xff]  }
 0x390   :  { %v1698_v36 = vpop.f32.mrf.mxu0  ;;  %v1739_v37 = vpop.f32.mrf.mxu1  ;;  %v2941_v29 = vld [vmem:[#allocation10 + $0x1e4] ss:$8 sps:$4 sm:$0xff]   ;;  %2241 = vmatprep.subr.bf16.mxu0 %v2938_v28  ;;  %v2947_v33 = vld [vmem:[#allocation10 + $0x1d4] ss:$8 sps:$4 sm:$0xff]  }
 0x391   :  { %v1745_v38 = vadd.f32 %v1744_v34, %v3320_v35  ;;  %2282 = vmatprep.subr.bf16.mxu1 %v2941_v29  ;;  %v2942_v34 = vld [vmem:[#allocation10 + $0xd0] ss:$8 sps:$4 sm:$0xff]   ;;  %v2950_v36 = vld [vmem:[#allocation10 + $0xc4] ss:$8 sps:$4 sm:$0xff]  }
 0x392   :  { %2283 = vmatpush2.bf16.msra.mxu1 %v2939_v31  ;;  %v2953_v37 = vld [vmem:[#allocation10 + $0x1c4] ss:$8 sps:$4 sm:$0xff]  }
 0x393   :  { %1746 = vadd.xlane.f32.xlu1 %v1745_v38  ;;  %2284 = vmatprep.subr.bf16.mxu1 %v2947_v33  ;;  %v2948_v38 = vld [vmem:[#allocation10 + $0xc0] ss:$8 sps:$4 sm:$0xff]  }
 0x41c   :  { %v1747_v16 = vpop.xlane.xlu1 %1746 }
 0x41d   :  { %v1748_v17 = vmul.f32 0.001953125, %v1747_v16 }
 0x41f   :  { %v3324_v19 = vsub.f32 %v3313_v25, %v1748_v17  ;;  %v3327_v20 = vsub.f32 %v3310_v21, %v1748_v17  ;;  %v3330_v3 = vsub.f32 %v3317_v30, %v1748_v17  ;;  %v3333_v50 = vsub.f32 %v3320_v35, %v1748_v17  ;;  %v2936_v30 = vld [vmem:[#allocation10 + $0xe0] ss:$8 sps:$4 sm:$0xff]   ;;  %v2945_v35 = vld [vmem:[#allocation10 + $0x1d0] ss:$8 sps:$4 sm:$0xff]  }
 0x420   :  { %2242 = vmatpush2.bf16.msra.mxu0 %v2936_v30  ;;  %2285 = vmatpush2.bf16.msra.mxu1 %v2945_v35 }
 0x421   :  { %v1753_v22 = vmul.f32 %v3324_v19, %v3324_v19  ;;  %v1754_v23 = vmul.f32 %v3327_v20, %v3327_v20  ;;  %v1755_v24 = vmul.f32 %v3330_v3, %v3330_v3  ;;  %v1756_v21 = vmul.f32 %v3333_v50, %v3333_v50  ;;  %2243 = vmatprep.subr.bf16.mxu0 %v2944_v32 }
 0x422   :  { %2286 = vmatprep.subr.bf16.mxu1 %v2953_v37 }
 0x423   :  { %v1757_v25 = vadd.f32 %v1754_v23, %v1753_v22 }
 0x424   :  { %2244 = vmatpush2.bf16.msra.mxu0 %v2942_v34  ;;  %2287 = vmatpush2.bf16.msra.mxu1 %v2951_v39 }
 0x425   :  { %v1758_v26 = vadd.f32 %v1757_v25, %v1755_v24  ;;  %2245 = vmatprep.subr.bf16.mxu0 %v2950_v36  ;;  %2288 = vmatprep.subr.bf16.mxu1 %v2959_v41 }
 0x427   :  { %v1759_v27 = vadd.f32 %v1758_v26, %v1756_v21 }
 0x428   :  { %2246 = vmatpush2.bf16.msra.mxu0 %v2948_v38  ;;  %2289 = vmatpush2.bf16.msra.mxu1 %v2957_v43 }
 0x429   :  { %1760 = vadd.xlane.f32.xlu0 %v1759_v27  ;;  %2247 = vmatprep.subr.bf16.mxu0 %v2956_v40 }
 0x42a   :  { %2290 = vmatprep.subr.bf16.mxu1 %v2965_v45 }
 0x42c   :  { %2248 = vmatpush2.bf16.msra.mxu0 %v2954_v42  ;;  %2291 = vmatpush2.bf16.msra.mxu1 %v2963_v47 }
 0x42d   :  { %2249 = vmatprep.subr.bf16.mxu0 %v2962_v44  ;;  %2292 = vmatprep.subr.bf16.mxu1 %v2971_v49 }
 0x430   :  { %2250 = vmatpush2.bf16.msra.mxu0 %v2960_v46  ;;  %2293 = vmatpush2.bf16.msra.mxu1 %v2969_v55 }
 0x431   :  { %2251 = vmatprep.subr.bf16.mxu0 %v2968_v48  ;;  %2294 = vmatprep.subr.bf16.mxu1 %v2977_v57 }
 0x434   :  { %2252 = vmatpush2.bf16.msra.mxu0 %v2966_v54  ;;  %2295 = vmatpush2.bf16.msra.mxu1 %v2975_v59 }
 0x435   :  { %2253 = vmatprep.subr.bf16.mxu0 %v2974_v56 }
 0x438   :  { %2254 = vmatpush2.bf16.msra.mxu0 %v2972_v58 }
 0x4b2   :  { %v1761_v60 = vpop.xlane.xlu0 %1760 }
 0x4b3   :  { %v1762_v61 = vmul.f32 0.001953125, %v1761_v60 }
 0x4b5   :  { %v1763_v62 = vadd.f32 1e-05, %v1762_v61 }
 0x4b7   :  { %2980 = vrsqrt.f32 %v1763_v62 }
 0x4c4   :  { %v2981_v52 = vpop.eup %2980 }
 0x4c5   :  { %v1766_v8 = vmul.f32 %v2981_v52, %v3327_v20  ;;  %v1768_v10 = vmul.f32 %v2981_v52, %v3333_v50  ;;  %v1765_v11 = vmul.f32 %v2981_v52, %v3324_v19  ;;  %v1767_v14 = vmul.f32 %v2981_v52, %v3330_v3  ;;  %v1891_v19 = vld [vmem:[%s3378_s12] sm:$0x3]  ;;  %s3082_s12 = scalar_lea.vmem %s2314_s24, 256 }
 0x4c6   :  { %v1896_v3 = vrot.slane %v1891_v19, %v3216_v9  ;;  %v1900_v30 = vrot.slane %v1891_v19, %v3221_v12  ;;  %p3083_p11 = scmp.ne.s32.totalorder %s2314_s24, %s3082_s12  ;;  %p3088_p13 = scmp.lt.s32.totalorder %s3082_s12, %s3082_s12 }
 0x4c7   :  { %v1791_v15 = vmul.f32 %v1777_v1, %v1766_v8  ;;  %v1793_v16 = vmul.f32 %v1785_v51, %v1768_v10  ;;  %v1790_v17 = vmul.f32 %v1773_v2, %v1765_v11  ;;  %v1792_v22 = vmul.f32 %v1781_v53, %v1767_v14 }
 0x4c8   :  { %p3089_p0 = por %p3088_p13, %p3087_p12 }
 0x4c9   :  { %v1816_v23 = vadd.f32 %v1802_v4, %v1791_v15  ;;  %v1818_v24 = vadd.f32 %v1810_v5, %v1793_v16  ;;  %v1815_v25 = vadd.f32 %v1798_v6, %v1790_v17  ;;  %v1817_v18 = vadd.f32 %v1806_v7, %v1792_v22 }
 0x4ca   :  { %p3090_p1 = pnand %p3089_p0, %p3083_p11 }
 0x4cb   :  { %v1820_v21 = vmax.f32 %v1816_v23, 0.0  ;;  %v1822_v26 = vmax.f32 %v1818_v24, 0.0  ;;  %v1819_v27 = vmax.f32 %v1815_v25, 0.0  ;;  %v1821_v13 = vmax.f32 %v1817_v18, 0.0 }
 0x4cd   :  { %v1824_v28 = vpack.c.bf16 %v1820_v21, %v1820_v21  ;;  %v1826_v20 = vpack.c.bf16 %v1822_v26, %v1822_v26  ;;  %v1823_v29 = vpack.c.bf16 %v1819_v27, %v1819_v27  ;;  %v1825_v50 = vpack.c.bf16 %v1821_v13, %v1821_v13 }
 0x4cf   :  { %2255 = vmatprep.mubr.bf16.mxu0 %v1824_v28  ;;  %2296 = vmatprep.mubr.bf16.mxu1 %v1826_v20 }
 0x4d0   :  { %2256 = vmatmul.mubr.bf16.vlgmr.msra.gmra.mxu0 %v1823_v29  ;;  %2297 = vmatmul.mubr.bf16.vlgmr.msra.gmra.mxu1 %v1825_v50 }
 0x590   :  { %v2257_v31 = vpop.f32.mrf.mxu0  ;;  %v2298_v32 = vpop.f32.mrf.mxu1 }
 0x591   :  { %v2258_v33 = vadd.f32 %v2257_v31, %v1896_v3 }
 0x592   :  { %v2259_v34 = vpop.f32.mrf.mxu0  ;;  %v2300_v35 = vpop.f32.mrf.mxu1 }
 0x593   :  { %v2299_v36 = vadd.f32 %v2298_v32, %v2258_v33  ;;  %v2260_v37 = vadd.f32 %v2259_v34, %v1900_v30 }
 0x594   :  { %v2261_v38 = vpop.f32.mrf.mxu0  ;;  %v2302_v39 = vpop.f32.mrf.mxu1 }
 0x595   :  { %2305 = vst [vmem:[#allocation11] sm:$0xff] %v2299_v36  ;;  %v2301_v40 = vadd.f32 %v2300_v35, %v2260_v37 }
 0x596   :  { %v2262_v41 = vpop.f32.mrf.mxu0  ;;  %v2303_v42 = vpop.f32.mrf.mxu1 }
 0x597   :  { %2306 = vst [vmem:[#allocation11 + $0x8] sm:$0xff] %v2301_v40 }
 0x598   :  { %3093 = shalt.err (!%p3090_p1)
}
 0x599   :  { %2316 = dma.vmem_to_hbm [thread:$0]  %s2314_s24, 256, %s3379_s13, [#allocation4]  }
 0x59a   :  { %3108 = dma.done.wait [#allocation4], 256  }
 0x59b   :  { %3109 = vsyncadd [#allocation4], 4294967040 }
 0x59c   :  { %2320 = vsyncpa [#allocation3], 1 }
 0x59d   :  { %2321 = vsyncpa [#allocation6], 1 }
 0x59e   :  { %2322 = vsyncpa [#allocation9], 1 }
 0x59f   :  { %2323 = vsyncpa [#allocation4], 1 }

</bundles_post_ra>
